<compile_context>
chip_gen: v7x
topology: tpu7x:2x2x1
jax: 0.10.0
libtpu: 0.0.40
codegen_flags: <defaults>
</compile_context>

<pallas_src>
import functools

import numpy as np

import jax
import jax.numpy as jnp
from jax import lax
from jax.experimental import pallas as pl
from jax.experimental.pallas import tpu as pltpu

EPS = 1e-5


def _cdiv(a, b):
    """Ceiling division that also works for negative numerators."""
    return -(-a // b)


# --------------------------------------------------------------------------
# Pallas kernels
# --------------------------------------------------------------------------

def _gemm_stats_kernel(mh_ref, mw_ref, b_ref, p_ref, w_ref, s_ref):
    """Pass 1 (recompute path): fused GEMM + masked per-tile BN partials.

    mh_ref/mw_ref : (TR, 1)  int32  sub-grid row/col index of each GEMM row
    b_ref         : (4, COL) int32  per-column valid [h_lo, h_hi) x [w_lo, w_hi)
    p_ref         : (TR, CK)  bf16  im2col patch rows (streamed)
    w_ref         : (CK, COL) bf16  phase-stacked, tap-reversed weights (resident)
    s_ref         : (1, 2, COL) f32 per-tile masked (sum, sum-of-squares)
    """
    acc = jnp.dot(p_ref[...], w_ref[...], preferred_element_type=jnp.float32)
    mh = mh_ref[...]
    mw = mw_ref[...]
    b = b_ref[...]
    valid = ((mh >= b[0:1, :]) & (mh < b[1:2, :]) &
             (mw >= b[2:3, :]) & (mw < b[3:4, :]))         # (TR, COL) bool
    m = valid.astype(jnp.float32)
    ym = acc * m
    s1 = jnp.sum(ym, axis=0, keepdims=True)                # (1, COL)
    s2 = jnp.sum(ym * acc, axis=0, keepdims=True)          # (1, COL) == sum(m*acc^2)
    s_ref[...] = jnp.concatenate([s1, s2], axis=0)[None]


def _gemm_stats_y_kernel(mh_ref, mw_ref, b_ref, p_ref, w_ref, y_ref, s_ref):
    """Pass 1 (stored-intermediate path): also emits the pre-BN activation as bf16."""
    acc = jnp.dot(p_ref[...], w_ref[...], preferred_element_type=jnp.float32)
    y_ref[...] = acc.astype(y_ref.dtype)                   # bf16 store; stats use f32 acc
    mh = mh_ref[...]
    mw = mw_ref[...]
    b = b_ref[...]
    valid = ((mh >= b[0:1, :]) & (mh < b[1:2, :]) &
             (mw >= b[2:3, :]) & (mw < b[3:4, :]))
    m = valid.astype(jnp.float32)
    ym = acc * m
    s1 = jnp.sum(ym, axis=0, keepdims=True)
    s2 = jnp.sum(ym * acc, axis=0, keepdims=True)
    s_ref[...] = jnp.concatenate([s1, s2], axis=0)[None]


def _gemm_bn_relu_kernel(p_ref, w_ref, scale_ref, shift_ref, o_ref):
    """Pass 2 (recompute path): GEMM again + per-channel scale/shift + ReLU."""
    acc = jnp.dot(p_ref[...], w_ref[...], preferred_element_type=jnp.float32)
    o_ref[...] = jnp.maximum(acc * scale_ref[...] + shift_ref[...],
                             0.0).astype(o_ref.dtype)


def _bn_relu_kernel(y_ref, scale_ref, shift_ref, o_ref):
    """Pass 2 (stored-intermediate path): bf16 y -> scale/shift + ReLU."""
    y = y_ref[...].astype(jnp.float32)
    o_ref[...] = jnp.maximum(y * scale_ref[...] + shift_ref[...],
                             0.0).astype(o_ref.dtype)


# --------------------------------------------------------------------------
# Static phase-decomposition geometry (pure Python, trace-time)
# --------------------------------------------------------------------------

def _axis_geom(in_size, out_size, k, s, p):
    """Geometry of the output-phase (sub-pixel) decomposition along one axis.

    Output position o belongs to phase r = (o + p) mod s with sub-grid index
    m = (o + p) // s; it is produced from input positions m - j using kernel
    taps k_tap = j*s + r.  All phases are computed over the common range
    m in [m_lo, m_hi] using jmax taps (missing taps get zero weights);
    per-phase validity is handled via the in-kernel mask / final crop.
    """
    jmax = (k - 1) // s + 1
    m_lo = _cdiv(p - s + 1, s)                 # min over phases of first valid m
    m_hi = (out_size - 1 + p) // s             # max over phases of last valid m
    m_cnt = m_hi - m_lo + 1
    lo = m_lo - (jmax - 1)                     # first input index read
    pad_before = max(0, -lo)
    pad_after = max(0, m_hi - (in_size - 1))
    start = lo + pad_before                    # slice start within padded input
    phases = []
    for r in range(s):
        m0 = _cdiv(p - r, s)
        m1 = (out_size - 1 + p - r) // s
        phases.append((m0 - m_lo, m1 - m0 + 1))  # (offset in [0,Mh), count)
    return jmax, m_cnt, pad_before, pad_after, start, m_lo, phases


# --------------------------------------------------------------------------
# Tile / VMEM budgeting
# --------------------------------------------------------------------------

def _vmem_budget_bytes():
    cap = 64 * 1024 * 1024
    try:
        cap = int(pltpu.get_tpu_info().vmem_capacity_bytes)
    except Exception:          # older jax / interpret runs: conservative default
        pass
    # ~48 MiB on v7x (64 MiB physical), 96 MiB on v5e/v6e (128 MiB physical).
    return max(32 * 1024 * 1024, min(cap * 3 // 4, 96 * 1024 * 1024))


def _vmem_bytes(tr, ck, col, store_y):
    patches = 2 * tr * ck * 2            # double-buffered bf16 patch tile
    idx = 2 * 2 * tr * 4 * 128           # (TR,1) int32 blocks are lane-padded
    bounds = 2 * 4 * col * 4
    weights = 2 * ck * col * 2           # resident bf16 weights
    stats = 2 * 2 * col * 4
    y16 = 2 * tr * col * 2
    out32 = 2 * tr * col * 4
    scale = 4 * col * 4
    pass1 = patches + idx + bounds + weights + stats + (y16 if store_y else 0)
    pass2 = scale + out32 + (y16 if store_y else patches + weights)
    return max(pass1, pass2)


def _pick_row_tile(r, ck, col, store_y, vmem_limit):
    if r >= 8192:
        tr = 1024
    elif r >= 2048:
        tr = 512
    elif r >= 512:
        tr = 256
    else:
        tr = max(16, _cdiv(r, 16) * 16)
    # G >= 2 so the "parallel" grid axis can shard across both v7x TensorCores.
    if _cdiv(r, tr) < 2 and tr > 16:
        tr = max(16, _cdiv(_cdiv(r, 2), 16) * 16)
    # Shrink if the blocks would not fit the per-chip VMEM budget with headroom.
    while tr > 64 and _vmem_bytes(tr, ck, col, store_y) > 0.8 * vmem_limit:
        tr = max(64, (tr // 2) // 16 * 16)
    return tr


# --------------------------------------------------------------------------
# Public wrapper (NCHW in / NCHW out, like the PyTorch module)
# --------------------------------------------------------------------------

def trans_conv_block(x_nchw, weight, bias, gamma, beta, *, stride, padding,
                     row_tile=None):
    """Forward pass of TransConv_Block.

    x_nchw : (N, Cin, H, W)
    weight : (Cin, Cout, K, K)  -- PyTorch ConvTranspose2d weight layout
    bias   : (Cout,)            -- accepted for API parity; under train-mode
                                   BatchNorm a per-channel constant cancels
                                   exactly, so it is (correctly) unused
    gamma, beta : (Cout,)       -- BatchNorm2d affine parameters
    """
    del bias  # cancelled exactly by the batch-mean subtraction of BatchNorm

    N, Cin, H, W = x_nchw.shape
    cin_w, Cout, K, K2 = weight.shape
    assert cin_w == Cin and K == K2
    s, p = int(stride), int(padding)
    assert s >= 1 and 0 <= p <= K - 1  # TODO(synk): padding > k-1 unsupported
    OH = (H - 1) * s - 2 * p + K
    OW = (W - 1) * s - 2 * p + K
    assert OH >= 1 and OW >= 1

    jmax_h, Mh, padb_h, pada_h, st_h, mlo_h, ph_h = _axis_geom(H, OH, K, s, p)
    jmax_w, Mw, padb_w, pada_w, st_w, mlo_w, ph_w = _axis_geom(W, OW, K, s, p)
    P = s * s
    CK = jmax_h * jmax_w * Cin          # contraction depth of the fused GEMM
    COL = P * Cout                      # lane width of the GEMM output
    R = N * Mh * Mw                     # GEMM rows = flattened (n, mh, mw)

    # Store the pre-BN intermediate (bf16) only when re-running the GEMM in
    # pass 2 would stream more HBM bytes than the activation round-trip.
    store_y = CK > 2 * COL

    vmem_limit = _vmem_budget_bytes()
    TR = int(row_tile) if row_tile else _pick_row_tile(R, CK, COL, store_y,
                                                       vmem_limit)
    assert TR % 16 == 0                 # bf16 blocks want (16, 128) tiling
    R_pad = _cdiv(R, TR) * TR
    G = R_pad // TR

    # ---- plain-JAX glue: compact bf16 im2col over the UN-dilated input ----
    # TODO(synk): fuse this halo gather into pass 1 with manual DMA to avoid
    #             materializing the jmax^2-duplicated patch matrix in HBM.
    x = jnp.transpose(x_nchw, (0, 2, 3, 1)).astype(jnp.bfloat16)          # NHWC bf16
    x_ext = jnp.pad(x, ((0, 0), (padb_h, pada_h), (padb_w, pada_w), (0, 0)))
    x_ext = x_ext[:, st_h:st_h + Mh + jmax_h - 1,
                  st_w:st_w + Mw + jmax_w - 1, :]
    parts = []
    for jh in range(jmax_h):
        for jw in range(jmax_w):
            parts.append(x_ext[:, jh:jh + Mh, jw:jw + Mw, :])
    patches = jnp.concatenate(parts, axis=-1).reshape(R, CK)
    patches = jnp.pad(patches, ((0, R_pad - R), (0, 0)))                  # bf16

    # Phase-stacked, tap-reversed weight matrix (CK, P*Cout); missing taps = 0.
    zero_blk = jnp.zeros((Cin, Cout), weight.dtype)
    w_cols = []
    for rh in range(s):
        for rw in range(s):
            rows = []
            for jh in range(jmax_h):
                kh = (jmax_h - 1 - jh) * s + rh
                for jw in range(jmax_w):
                    kw = (jmax_w - 1 - jw) * s + rw
                    rows.append(weight[:, :, kh, kw]
                                if (kh < K and kw < K) else zero_blk)
            w_cols.append(jnp.concatenate(rows, axis=0))                  # (CK, Cout)
    w_all = jnp.concatenate(w_cols, axis=1).astype(jnp.bfloat16)          # (CK, COL)

    # Tiny per-row sub-grid indices + per-column phase-validity bounds; pass 1
    # rebuilds the (TR, COL) validity mask from these with VPU compares instead
    # of streaming a full-size (R_pad, COL) mask from HBM.
    q = np.arange(Mh * Mw, dtype=np.int32)
    mh_np = np.pad(np.tile(q // Mw, N), (0, R_pad - R), constant_values=-1)
    mw_np = np.pad(np.tile(q % Mw, N), (0, R_pad - R), constant_values=-1)
    mh_rows = jnp.asarray(mh_np.reshape(R_pad, 1))
    mw_rows = jnp.asarray(mw_np.reshape(R_pad, 1))
    bnp = np.zeros((4, COL), np.int32)
    for rh in range(s):
        oh_, ch_ = ph_h[rh]
        for rw in range(s):
            ow_, cw_ = ph_w[rw]
            c0 = (rh * s + rw) * Cout
            bnp[0, c0:c0 + Cout] = oh_
            bnp[1, c0:c0 + Cout] = oh_ + ch_
            bnp[2, c0:c0 + Cout] = ow_
            bnp[3, c0:c0 + Cout] = ow_ + cw_
    bounds = jnp.asarray(bnp)

    cparams = pltpu.CompilerParams(
        dimension_semantics=("parallel",),        # row tiles are independent
        vmem_limit_bytes=vmem_limit)

    row_specs = [
        pl.BlockSpec((TR, 1), lambda i: (i, 0)),         # mh (tiny, streamed)
        pl.BlockSpec((TR, 1), lambda i: (i, 0)),         # mw (tiny, streamed)
        pl.BlockSpec((4, COL), lambda i: (0, 0)),        # phase bounds (resident)
        pl.BlockSpec((TR, CK), lambda i: (i, 0)),        # patches (streamed)
        pl.BlockSpec((CK, COL), lambda i: (0, 0)),       # weights (resident)
    ]
    stats_spec = pl.BlockSpec((1, 2, COL), lambda i: (i, 0, 0))
    row_out_spec = pl.BlockSpec((TR, COL), lambda i: (i, 0))
    col_spec = pl.BlockSpec((1, COL), lambda i: (0, 0))

    gemm_flops = 2 * R_pad * CK * COL

    # ---- pass 1: row-tiled GEMM + masked per-tile BN partial statistics ----
    if store_y:
        bytes1 = (2 * R_pad * CK + 2 * CK * COL + 8 * R_pad + 16 * COL
                  + 2 * R_pad * COL + 4 * G * 2 * COL)
        y_all, stats = pl.pallas_call(
            _gemm_stats_y_kernel,
            grid=(G,),
            in_specs=row_specs,
            out_specs=[row_out_spec, stats_spec],
            out_shape=[jax.ShapeDtypeStruct((R_pad, COL), jnp.bfloat16),
                       jax.ShapeDtypeStruct((G, 2, COL), jnp.float32)],
            compiler_params=cparams,
            cost_estimate=pl.CostEstimate(flops=gemm_flops + 6 * R_pad * COL,
                                          transcendentals=0,
                                          bytes_accessed=bytes1),
        )(mh_rows, mw_rows, bounds, patches, w_all)
    else:
        bytes1 = (2 * R_pad * CK + 2 * CK * COL + 8 * R_pad + 16 * COL
                  + 4 * G * 2 * COL)
        stats = pl.pallas_call(
            _gemm_stats_kernel,
            grid=(G,),
            in_specs=row_specs,
            out_specs=stats_spec,
            out_shape=jax.ShapeDtypeStruct((G, 2, COL), jnp.float32),
            compiler_params=cparams,
            cost_estimate=pl.CostEstimate(flops=gemm_flops + 6 * R_pad * COL,
                                          transcendentals=0,
                                          bytes_accessed=bytes1),
        )(mh_rows, mw_rows, bounds, patches, w_all)

    # ---- finalize BatchNorm statistics (tiny reduction, plain JAX) ----
    count = float(N * OH * OW)
    tot = stats.sum(axis=0).reshape(2, P, Cout).sum(axis=1)               # (2, Cout)
    mean = tot[0] / count
    var = jnp.maximum(tot[1] / count - mean * mean, 0.0)                  # E[x^2]-mean^2
    inv = lax.rsqrt(var + EPS)
    scale_c = gamma.astype(jnp.float32) * inv
    shift_c = beta.astype(jnp.float32) - mean * scale_c
    scale_col = jnp.tile(scale_c, P).reshape(1, COL)
    shift_col = jnp.tile(shift_c, P).reshape(1, COL)

    # ---- pass 2: scale/shift + ReLU (recompute GEMM, or read bf16 y) ----
    if store_y:
        bytes2 = 2 * R_pad * COL + 4 * R_pad * COL + 8 * COL
        z = pl.pallas_call(
            _bn_relu_kernel,
            grid=(G,),
            in_specs=[row_out_spec, col_spec, col_spec],
            out_specs=row_out_spec,
            out_shape=jax.ShapeDtypeStruct((R_pad, COL), jnp.float32),
            compiler_params=cparams,
            cost_estimate=pl.CostEstimate(flops=3 * R_pad * COL,
                                          transcendentals=0,
                                          bytes_accessed=bytes2),
        )(y_all, scale_col, shift_col)
    else:
        bytes2 = 2 * R_pad * CK + 2 * CK * COL + 8 * COL + 4 * R_pad * COL
        z = pl.pallas_call(
            _gemm_bn_relu_kernel,
            grid=(G,),
            in_specs=[pl.BlockSpec((TR, CK), lambda i: (i, 0)),
                      pl.BlockSpec((CK, COL), lambda i: (0, 0)),
                      col_spec, col_spec],
            out_specs=row_out_spec,
            out_shape=jax.ShapeDtypeStruct((R_pad, COL), jnp.float32),
            compiler_params=cparams,
            cost_estimate=pl.CostEstimate(flops=gemm_flops + 3 * R_pad * COL,
                                          transcendentals=0,
                                          bytes_accessed=bytes2),
        )(patches, w_all, scale_col, shift_col)

    # ---- interleave the s*s phase grids: one reshape/transpose + crop ----
    # Grid index (mi*s + r) maps to output o = mi*s + r + (m_lo*s - p), so the
    # crop offset p - m_lo*s removes exactly the invalid phase entries.
    y6 = z[:R].reshape(N, Mh, Mw, s, s, Cout)
    y6 = jnp.transpose(y6, (0, 1, 3, 2, 4, 5)).reshape(N, Mh * s, Mw * s, Cout)
    off_h = p - mlo_h * s
    off_w = p - mlo_w * s
    out = y6[:, off_h:off_h + OH, off_w:off_w + OW, :]
    return jnp.transpose(out, (0, 3, 1, 2))                               # NCHW


# --------------------------------------------------------------------------
# Pure-JAX reference (mirrors the PyTorch module) for the correctness check
# --------------------------------------------------------------------------

def _reference(x_nchw, weight, bias, gamma, beta, *, stride, padding):
    Cin, Cout, K, _ = weight.shape
    # Mirror the kernel's precision policy: MXU operands are bf16 (f32 accum).
    x = x_nchw.astype(jnp.bfloat16).astype(jnp.float32)
    w = weight.astype(jnp.bfloat16).astype(jnp.float32)
    # conv-transpose == lhs-dilated conv with flipped, (in,out)-swapped kernel
    w_oihw = jnp.transpose(w[:, :, ::-1, ::-1], (1, 0, 2, 3))            # (Cout,Cin,K,K)
    y = lax.conv_general_dilated(
        x, w_oihw, window_strides=(1, 1),
        padding=[(K - 1 - padding, K - 1 - padding)] * 2,
        lhs_dilation=(stride, stride),
        dimension_numbers=("NCHW", "OIHW", "NCHW"))
    y = y + bias.reshape(1, Cout, 1, 1)
    mean = jnp.mean(y, axis=(0, 2, 3), keepdims=True)
    var = jnp.mean((y - mean) ** 2, axis=(0, 2, 3), keepdims=True)
    y = (y - mean) * lax.rsqrt(var + EPS)
    y = y * gamma.reshape(1, Cout, 1, 1) + beta.reshape(1, Cout, 1, 1)
    return jnp.maximum(y, 0.0)


def _run_case(N, Cin, Cout, H, W, K, stride, padding, atol=2e-3, rtol=2e-3):
    key = jax.random.PRNGKey(0)
    kw_, kb_, kx_ = jax.random.split(key, 3)
    weight = jax.random.normal(kw_, (Cin, Cout, K, K), jnp.float32) * 0.1
    bias = jax.random.normal(kb_, (Cout,), jnp.float32) * 0.1
    gamma = jnp.ones((Cout,), jnp.float32)        # BatchNorm2d default init
    beta = jnp.zeros((Cout,), jnp.float32)
    x = jax.random.normal(kx_, (N, Cin, H, W), jnp.float32)

    run = jax.jit(functools.partial(trans_conv_block,
                                    stride=stride, padding=padding))
    out = jax.block_until_ready(run(x, weight, bias, gamma, beta))

    OH = (H - 1) * stride - 2 * padding + K
    OW = (W - 1) * stride - 2 * padding + K
    ref = _reference(x, weight, bias, gamma, beta, stride=stride, padding=padding)
    assert out.shape == (N, Cout, OH, OW), (out.shape, (N, Cout, OH, OW))
    err = float(jnp.max(jnp.abs(out - ref)))
    assert jnp.allclose(out, ref, atol=atol, rtol=rtol), \
        f"mismatch vs reference, max abs err = {err}"


if __name__ == "__main__":
    # Primary toy shape consistent with the module (k=3, stride=2, padding=1);
    # exercises the recompute path (no stored intermediate).
    _run_case(N=2, Cin=4, Cout=8, H=16, W=16, K=3, stride=2, padding=1)
    # Second geometry (k=2, stride=2, padding=0) exercising the generic
    # phase-decomposition path.
    _run_case(N=2, Cin=4, Cout=8, H=8, W=8, K=2, stride=2, padding=0)
    # Cin >> Cout exercises the stored-intermediate (bf16 y) path; the bf16
    # pre-BN round-trip adds ~2^-9 relative error, hence the looser tolerance.
    _run_case(N=2, Cin=32, Cout=4, H=8, W=8, K=3, stride=2, padding=1,
              atol=5e-3, rtol=5e-3)
    print("KERNEL_OK")
</pallas_src>

<mosaic_0001>
module attributes {stable_mosaic.version = 11 : i64} {
  func.func @_gemm_stats_kernel(%arg0: i32, %arg1: memref<256x1xi32, #tpu.memory_space<vmem>>, %arg2: memref<256x1xi32, #tpu.memory_space<vmem>>, %arg3: memref<4x32xi32, #tpu.memory_space<vmem>>, %arg4: memref<256x16xbf16, #tpu.memory_space<vmem>>, %arg5: memref<16x32xbf16, #tpu.memory_space<vmem>>, %arg6: memref<1x2x32xf32, #tpu.memory_space<vmem>>) attributes {dimension_semantics = [#tpu.dimension_semantics<parallel>], iteration_bounds = array<i64: 2>, scalar_prefetch = 0 : i64, scratch_operands = 0 : i64, tpu.core_type = #tpu.core_type<tc>, window_params = [{transform_indices = @transform_0, window_bounds = array<i64: 256, 1>}, {transform_indices = @transform_1, window_bounds = array<i64: 256, 1>}, {pipeline_mode = #tpu.pipeline_mode<synchronous>, transform_indices = @transform_2, window_bounds = array<i64: 4, 32>}, {transform_indices = @transform_3, window_bounds = array<i64: 256, 16>}, {pipeline_mode = #tpu.pipeline_mode<synchronous>, transform_indices = @transform_4, window_bounds = array<i64: 16, 32>}, {transform_indices = @transform_5, window_bounds = array<i64: 1, 2, 32>}]} {
    %c0 = arith.constant 0 : index
    %c0_0 = arith.constant 0 : index
    %0 = vector.load %arg4[%c0, %c0_0] : memref<256x16xbf16, #tpu.memory_space<vmem>>, vector<256x16xbf16>
    %c0_1 = arith.constant 0 : index
    %c0_2 = arith.constant 0 : index
    %1 = vector.load %arg5[%c0_1, %c0_2] : memref<16x32xbf16, #tpu.memory_space<vmem>>, vector<16x32xbf16>
    %cst = arith.constant dense<0.000000e+00> : vector<256x32xf32>
    %2 = tpu.matmul %0, %1, %cst {dimension_numbers = #tpu.dot_dimension_numbers<[1], [0], [0], [1], [0, 0, 1, 1], [], []>} : vector<256x16xbf16>, vector<16x32xbf16>, vector<256x32xf32> -> vector<256x32xf32>
    %c0_3 = arith.constant 0 : index
    %c0_4 = arith.constant 0 : index
    %3 = vector.load %arg1[%c0_3, %c0_4] : memref<256x1xi32, #tpu.memory_space<vmem>>, vector<256x1xi32>
    %c0_5 = arith.constant 0 : index
    %c0_6 = arith.constant 0 : index
    %4 = vector.load %arg2[%c0_5, %c0_6] : memref<256x1xi32, #tpu.memory_space<vmem>>, vector<256x1xi32>
    %c0_7 = arith.constant 0 : index
    %c0_8 = arith.constant 0 : index
    %5 = vector.load %arg3[%c0_7, %c0_8] : memref<4x32xi32, #tpu.memory_space<vmem>>, vector<4x32xi32>
    %6 = vector.extract_strided_slice %5 {offsets = [0, 0], sizes = [1, 32], strides = [1, 1]} : vector<4x32xi32> to vector<1x32xi32>
    %7 = vector.broadcast %3 : vector<256x1xi32> to vector<256x32xi32>
    %8 = vector.broadcast %6 : vector<1x32xi32> to vector<256x32xi32>
    %9 = arith.cmpi sge, %7, %8 : vector<256x32xi32>
    %10 = vector.extract_strided_slice %5 {offsets = [1, 0], sizes = [1, 32], strides = [1, 1]} : vector<4x32xi32> to vector<1x32xi32>
    %11 = vector.broadcast %3 : vector<256x1xi32> to vector<256x32xi32>
    %12 = vector.broadcast %10 : vector<1x32xi32> to vector<256x32xi32>
    %13 = arith.cmpi slt, %11, %12 : vector<256x32xi32>
    %14 = arith.andi %9, %13 : vector<256x32xi1>
    %15 = vector.extract_strided_slice %5 {offsets = [2, 0], sizes = [1, 32], strides = [1, 1]} : vector<4x32xi32> to vector<1x32xi32>
    %16 = vector.broadcast %4 : vector<256x1xi32> to vector<256x32xi32>
    %17 = vector.broadcast %15 : vector<1x32xi32> to vector<256x32xi32>
    %18 = arith.cmpi sge, %16, %17 : vector<256x32xi32>
    %19 = arith.andi %14, %18 : vector<256x32xi1>
    %20 = vector.extract_strided_slice %5 {offsets = [3, 0], sizes = [1, 32], strides = [1, 1]} : vector<4x32xi32> to vector<1x32xi32>
    %21 = vector.broadcast %4 : vector<256x1xi32> to vector<256x32xi32>
    %22 = vector.broadcast %20 : vector<1x32xi32> to vector<256x32xi32>
    %23 = arith.cmpi slt, %21, %22 : vector<256x32xi32>
    %24 = arith.andi %19, %23 : vector<256x32xi1>
    %25 = arith.extui %24 : vector<256x32xi1> to vector<256x32xi32>
    %26 = arith.sitofp %25 : vector<256x32xi32> to vector<256x32xf32>
    %27 = arith.mulf %2, %26 : vector<256x32xf32>
    %cst_9 = arith.constant dense<0.000000e+00> : vector<32xf32>
    %28 = vector.multi_reduction <add>, %27, %cst_9 [0] : vector<256x32xf32> to vector<32xf32>
    %29 = vector.shape_cast %28 : vector<32xf32> to vector<1x32xf32>
    %30 = arith.mulf %27, %2 : vector<256x32xf32>
    %cst_10 = arith.constant dense<0.000000e+00> : vector<32xf32>
    %31 = vector.multi_reduction <add>, %30, %cst_10 [0] : vector<256x32xf32> to vector<32xf32>
    %32 = vector.shape_cast %31 : vector<32xf32> to vector<1x32xf32>
    %33 = tpu.concatenate %29, %32 in 0 : vector<1x32xf32>, vector<1x32xf32> -> vector<2x32xf32>
    %34 = vector.shape_cast %33 : vector<2x32xf32> to vector<1x2x32xf32>
    %c0_11 = arith.constant 0 : index
    %c0_12 = arith.constant 0 : index
    %c0_13 = arith.constant 0 : index
    %35 = vector.load %arg6[%c0_11, %c0_12, %c0_13] : memref<1x2x32xf32, #tpu.memory_space<vmem>>, vector<1x2x32xf32>
    tpu.vector_store %arg6[%c0_11, %c0_12, %c0_13], %34 {strides = array<i32>} : memref<1x2x32xf32, #tpu.memory_space<vmem>>, vector<1x2x32xf32>,
    return
  }
  func.func @transform_0(%arg0: i32) -> (i32, i32) {
    %c0_i32 = arith.constant 0 : i32
    %c0_i32_0 = arith.constant 0 : i32
    return %arg0, %c0_i32 : i32, i32
  }
  func.func @transform_1(%arg0: i32) -> (i32, i32) {
    %c0_i32 = arith.constant 0 : i32
    %c0_i32_0 = arith.constant 0 : i32
    return %arg0, %c0_i32 : i32, i32
  }
  func.func @transform_2(%arg0: i32) -> (i32, i32) {
    %c0_i32 = arith.constant 0 : i32
    %c0_i32_0 = arith.constant 0 : i32
    %c0_i32_1 = arith.constant 0 : i32
    return %c0_i32, %c0_i32_0 : i32, i32
  }
  func.func @transform_3(%arg0: i32) -> (i32, i32) {
    %c0_i32 = arith.constant 0 : i32
    %c0_i32_0 = arith.constant 0 : i32
    return %arg0, %c0_i32 : i32, i32
  }
  func.func @transform_4(%arg0: i32) -> (i32, i32) {
    %c0_i32 = arith.constant 0 : i32
    %c0_i32_0 = arith.constant 0 : i32
    %c0_i32_1 = arith.constant 0 : i32
    return %c0_i32, %c0_i32_0 : i32, i32
  }
  func.func @transform_5(%arg0: i32) -> (i32, i32, i32) {
    %c0_i32 = arith.constant 0 : i32
    %c0_i32_0 = arith.constant 0 : i32
    %c0_i32_1 = arith.constant 0 : i32
    return %arg0, %c0_i32, %c0_i32_0 : i32, i32, i32
  }
}

module attributes {stable_mosaic.version = 11 : i64} {
  func.func @_gemm_bn_relu_kernel(%arg0: i32, %arg1: memref<256x16xbf16, #tpu.memory_space<vmem>>, %arg2: memref<16x32xbf16, #tpu.memory_space<vmem>>, %arg3: memref<1x32xf32, #tpu.memory_space<vmem>>, %arg4: memref<1x32xf32, #tpu.memory_space<vmem>>, %arg5: memref<256x32xf32, #tpu.memory_space<vmem>>) attributes {dimension_semantics = [#tpu.dimension_semantics<parallel>], iteration_bounds = array<i64: 2>, scalar_prefetch = 0 : i64, scratch_operands = 0 : i64, tpu.core_type = #tpu.core_type<tc>, window_params = [{transform_indices = @transform_0, window_bounds = array<i64: 256, 16>}, {pipeline_mode = #tpu.pipeline_mode<synchronous>, transform_indices = @transform_1, window_bounds = array<i64: 16, 32>}, {pipeline_mode = #tpu.pipeline_mode<synchronous>, transform_indices = @transform_2, window_bounds = array<i64: 1, 32>}, {pipeline_mode = #tpu.pipeline_mode<synchronous>, transform_indices = @transform_3, window_bounds = array<i64: 1, 32>}, {transform_indices = @transform_4, window_bounds = array<i64: 256, 32>}]} {
    %c0 = arith.constant 0 : index
    %c0_0 = arith.constant 0 : index
    %0 = vector.load %arg1[%c0, %c0_0] : memref<256x16xbf16, #tpu.memory_space<vmem>>, vector<256x16xbf16>
    %c0_1 = arith.constant 0 : index
    %c0_2 = arith.constant 0 : index
    %1 = vector.load %arg2[%c0_1, %c0_2] : memref<16x32xbf16, #tpu.memory_space<vmem>>, vector<16x32xbf16>
    %cst = arith.constant dense<0.000000e+00> : vector<256x32xf32>
    %2 = tpu.matmul %0, %1, %cst {dimension_numbers = #tpu.dot_dimension_numbers<[1], [0], [0], [1], [0, 0, 1, 1], [], []>} : vector<256x16xbf16>, vector<16x32xbf16>, vector<256x32xf32> -> vector<256x32xf32>
    %c0_3 = arith.constant 0 : index
    %c0_4 = arith.constant 0 : index
    %3 = vector.load %arg3[%c0_3, %c0_4] : memref<1x32xf32, #tpu.memory_space<vmem>>, vector<1x32xf32>
    %4 = vector.broadcast %3 : vector<1x32xf32> to vector<256x32xf32>
    %5 = arith.mulf %2, %4 : vector<256x32xf32>
    %c0_5 = arith.constant 0 : index
    %c0_6 = arith.constant 0 : index
    %6 = vector.load %arg4[%c0_5, %c0_6] : memref<1x32xf32, #tpu.memory_space<vmem>>, vector<1x32xf32>
    %7 = vector.broadcast %6 : vector<1x32xf32> to vector<256x32xf32>
    %8 = arith.addf %5, %7 : vector<256x32xf32>
    %cst_7 = arith.constant 0.000000e+00 : f32
    %9 = vector.broadcast %cst_7 : f32 to vector<256x32xf32>
    %10 = arith.maximumf %8, %9 : vector<256x32xf32>
    %c0_8 = arith.constant 0 : index
    %c0_9 = arith.constant 0 : index
    %11 = vector.load %arg5[%c0_8, %c0_9] : memref<256x32xf32, #tpu.memory_space<vmem>>, vector<256x32xf32>
    tpu.vector_store %arg5[%c0_8, %c0_9], %10 {strides = array<i32>} : memref<256x32xf32, #tpu.memory_space<vmem>>, vector<256x32xf32>,
    return
  }
  func.func @transform_0(%arg0: i32) -> (i32, i32) {
    %c0_i32 = arith.constant 0 : i32
    %c0_i32_0 = arith.constant 0 : i32
    return %arg0, %c0_i32 : i32, i32
  }
  func.func @transform_1(%arg0: i32) -> (i32, i32) {
    %c0_i32 = arith.constant 0 : i32
    %c0_i32_0 = arith.constant 0 : i32
    %c0_i32_1 = arith.constant 0 : i32
    return %c0_i32, %c0_i32_0 : i32, i32
  }
  func.func @transform_2(%arg0: i32) -> (i32, i32) {
    %c0_i32 = arith.constant 0 : i32
    %c0_i32_0 = arith.constant 0 : i32
    %c0_i32_1 = arith.constant 0 : i32
    return %c0_i32, %c0_i32_0 : i32, i32
  }
  func.func @transform_3(%arg0: i32) -> (i32, i32) {
    %c0_i32 = arith.constant 0 : i32
    %c0_i32_0 = arith.constant 0 : i32
    %c0_i32_1 = arith.constant 0 : i32
    return %c0_i32, %c0_i32_0 : i32, i32
  }
  func.func @transform_4(%arg0: i32) -> (i32, i32) {
    %c0_i32 = arith.constant 0 : i32
    %c0_i32_0 = arith.constant 0 : i32
    return %arg0, %c0_i32 : i32, i32
  }
}

</mosaic_0001>

<bundles_post_ra>
// kernel: tile.18
= control target key start
LH: loop header
LB: loop body
LE: loop exit
PB: predicated region body
PF: predicated region fallthrough
CT: control target
= control target key end

     0   :  { %s22_s0 = inlined_call_operand.vmem [shape: f32[8], index: 0, kind: input, shape index: {}]   ;;  %s23_s1 = inlined_call_operand.vmem [shape: f32[4,8], index: 1, kind: output, shape index: {}]  }
   0x1   :  { %v4_v0 = vld [vmem:[%s22_s0] ss:$0 sm:$0xff] }
   0x2   :  { %5 = vst [vmem:[%s23_s1] sm:$0xf] %v4_v0 }

// kernel: tile.19
= control target key start
LH: loop header
LB: loop body
LE: loop exit
PB: predicated region body
PF: predicated region fallthrough
CT: control target
= control target key end

     0   :  { %vm7_vm0 = vcmask 64512   ;;  %s37_s8 = smov 8   ;;  %s38_s9 = smov 16   ;;  %vm13_vm1 = vcmask 261312   ;;  %vm19_vm2 = vcmask 195712   ;;  %vm25_vm3 = vcmask 130112   ;;  %s55_s0 = inlined_call_operand.vmem [shape: f32[4,8], index: 0, kind: input, shape index: {}]   ;;  %s56_s1 = inlined_call_operand.vmem [shape: f32[1,32], index: 1, kind: output, shape index: {}]  }
   0x1   :  { %v4_v0 = vld [vmem:[%s55_s0] sm:$0xf]  ;;  %s36_s0 = smov 24  }
   0x2   :  { %5 = vst [vmem:[#allocation1] sm:$0xf] %v4_v0 }
   0x9   :  { %v10_v1 = vld [vmem:[#allocation1 + $0x3] sm:$0x1]   ;;  %v22_v2 = vld [vmem:[#allocation1 + $0x1] sm:$0x1]   ;;  %v6_v3 = vld [vmem:[#allocation1] sm:$0x1]  }
   0xa   :  { %11 = vrot.lane.b32.xlu0 %v10_v1, %s36_s0  ;;  %23 = vrot.lane.b32.xlu1 %v22_v2, %s37_s8  ;;  %v16_v4 = vld [vmem:[#allocation1 + $0x2] sm:$0x1]   ;;  %8 = vst.msk [vmem:[#allocation0] sm:$0x1] %vm7_vm0, %v6_v3  }
   0xe   :  { %17 = vrot.lane.b32.xlu0 %v16_v4, %s38_s9 }
  0x7c   :  { %v12_v5 = vpop.permute.xlu0 %11   ;;  %v24_v6 = vpop.permute.xlu1 %23  }
  0x7d   :  { %14 = vst.msk [vmem:[#allocation0] sm:$0x1] %vm13_vm1, %v12_v5  }
  0x80   :  { %v18_v7 = vpop.permute.xlu0 %17  }
  0x81   :  { %20 = vst.msk [vmem:[#allocation0] sm:$0x1] %vm19_vm2, %v18_v7  }
  0x82   :  { %26 = vst.msk [vmem:[#allocation0] sm:$0x1] %vm25_vm3, %v24_v6  }
  0x89   :  { %v30_v8 = vld [vmem:[#allocation0] sm:$0x1] }
  0x8a   :  { %32 = vst [vmem:[%s56_s1] sm:$0x1] %v30_v8 }

// kernel: trans_conv_block.3
= control target key start
LH: loop header
LB: loop body
LE: loop exit
PB: predicated region body
PF: predicated region fallthrough
CT: control target
= control target key end

     0   :  { %s888_s15 = smov 0   ;;  %s1086_s0 = inlined_call_operand.vmem [shape: bf16[512,16], index: 0, kind: input, shape index: {}]   ;;  %s1087_s1 = inlined_call_operand.vmem [shape: bf16[16,32], index: 1, kind: input, shape index: {}]   ;;  %s1088_s2 = inlined_call_operand.vmem [shape: f32[1,32], index: 2, kind: input, shape index: {}]   ;;  %s1089_s3 = inlined_call_operand.vmem [shape: f32[1,32], index: 3, kind: input, shape index: {}]   ;;  %s1090_s4 = inlined_call_operand.vmem [shape: f32[512,32], index: 4, kind: output, shape index: {}]  }
   0x1 LB: > { %s731_s16 = sadd.s32 4294967295, %s861_s15   ;;  %p735_p0 = scmp.ge.s32.totalorder %s861_s15, 1  ;;  %s861_s15 = sphi %s888_s15, %s14_s15  }
   0x2   : > { %p163_p1 = scmp.lt.s32.totalorder %s861_s15, 3 }
   0x4   : > { %p164_p2 = pnand %p735_p0, %p163_p1 }
   0x5   : > { %v838_v0 = vld [vmem:[%s1087_s1] sm:$0xff] (!%p164_p2)   ;;  %s736_s19 = sshll.u32 (!%p164_p2), %s731_s16, 5  ;;  %vm322_vm0 = vcmask (!%p164_p2), 130048   ;;  %vm642_vm1 = vcmask (!%p164_p2), 261120  }
   0x6   : > { %167 = sbr.rel (%p164_p2) target bundleno = 265 (0x109), region = 36  ;;  %p190_p3 = scmp.lt.s32.totalorder (!%p164_p2), %s736_s19, 63  ;;  %794 = vmatprep.subr.bf16.mxu0 (!%p164_p2), %v838_v0  ;;  %828 = vmatprep.subr.bf16.mxu1 (!%p164_p2), %v838_v0  ;;  %v942_v17 = vld [vmem:[%s1088_s2] ss:$0 sm:$0xff] (!%p164_p2) }
   0x7   : > { %795 = vmatpush3.bf16.msra.mxu0 (!%p164_p2), %v838_v0  ;;  %829 = vmatpush3.bf16.msra.mxu1 (!%p164_p2), %v838_v0  ;;  %v947_v19 = vld [vmem:[%s1089_s3] ss:$0 sm:$0xff] (!%p164_p2) }
   0xd   : > { %s1092_s19 = smov (!%p190_p3, %s736_s19), 63 }
   0xe   : > { %s737_s20 = sshll.u32 %s1092_s19, 2  ;;  %s739_s28 = sshll.u32 %s1092_s19, 3 }
   0xf   : > { %s905_s23 = scalar_lea.vmem %s1086_s0, %s737_s20  ;;  %s959_s5 = scalar_lea.vmem %s1090_s4, %s739_s28 }
  0x10   : > { %v839_v1 = vld [vmem:[%s905_s23] sm:$0xff]   ;;  %v841_v3 = vld [vmem:[%s905_s23 + $0x8] sm:$0xff]   ;;  %v843_v5 = vld [vmem:[%s905_s23 + $0x10] sm:$0xff]  }
  0x11   : > { %v840_v2 = vld [vmem:[%s905_s23 + $0x40] sm:$0xff]   ;;  %796 = vmatprep.mubr.msk.bf16.mxu0 %vm322_vm0, %v839_v1  ;;  %v842_v4 = vld [vmem:[%s905_s23 + $0x48] sm:$0xff]   ;;  %v844_v6 = vld [vmem:[%s905_s23 + $0x50] sm:$0xff]  }
  0x12   : > { %812 = vmatprep.mubr.msk.bf16.mxu1 %vm322_vm0, %v840_v2  ;;  %797 = vmatmul.mubr.msk.bf16.vlgmr.msra.gmra.mrb[0].mxu0 %vm322_vm0, %v841_v3  ;;  %v845_v7 = vld [vmem:[%s905_s23 + $0x18] sm:$0xff]   ;;  %v847_v9 = vld [vmem:[%s905_s23 + $0x20] sm:$0xff]   ;;  %v849_v11 = vld [vmem:[%s905_s23 + $0x28] sm:$0xff]  }
  0x13   : > { %813 = vmatmul.mubr.msk.bf16.vlgmr.msra.gmra.mrb[0].mxu1 %vm322_vm0, %v842_v4  ;;  %800 = vmatprep.mubr.msk.bf16.mxu0 %vm322_vm0, %v843_v5  ;;  %v846_v8 = vld [vmem:[%s905_s23 + $0x58] sm:$0xff]   ;;  %v848_v10 = vld [vmem:[%s905_s23 + $0x60] sm:$0xff]   ;;  %v850_v12 = vld [vmem:[%s905_s23 + $0x68] sm:$0xff]  }
  0x14   : > { %816 = vmatprep.mubr.msk.bf16.mxu1 %vm322_vm0, %v844_v6  ;;  %v851_v13 = vld [vmem:[%s905_s23 + $0x30] sm:$0xff]   ;;  %v853_v15 = vld [vmem:[%s905_s23 + $0x38] sm:$0xff]  }
  0x15   : > { %v852_v14 = vld [vmem:[%s905_s23 + $0x70] sm:$0xff]   ;;  %v854_v16 = vld [vmem:[%s905_s23 + $0x78] sm:$0xff]  }
  0x1a   : > { %801 = vmatmul.mubr.msk.bf16.gmra.mrb[4].mxu0 %vm322_vm0, %v845_v7 }
  0x1b   : > { %817 = vmatmul.mubr.msk.bf16.gmra.mrb[4].mxu1 %vm322_vm0, %v846_v8  ;;  %804 = vmatprep.mubr.msk.bf16.mxu0 %vm322_vm0, %v847_v9 }
  0x1c   : > { %820 = vmatprep.mubr.msk.bf16.mxu1 %vm322_vm0, %v848_v10 }
  0x22   : > { %805 = vmatmul.mubr.msk.bf16.gmra.mrb[8].mxu0 %vm322_vm0, %v849_v11 }
  0x23   : > { %821 = vmatmul.mubr.msk.bf16.gmra.mrb[8].mxu1 %vm322_vm0, %v850_v12  ;;  %808 = vmatprep.mubr.msk.bf16.mxu0 %vm322_vm0, %v851_v13 }
  0x24   : > { %824 = vmatprep.mubr.msk.bf16.mxu1 %vm322_vm0, %v852_v14 }
  0x2a   : > { %809 = vmatmul.mubr.msk.bf16.gmra.mrb[12].mxu0 %vm322_vm0, %v853_v15 }
  0x2b   : > { %825 = vmatmul.mubr.msk.bf16.gmra.mrb[12].mxu1 %vm322_vm0, %v854_v16 }
  0xe5   : > { %v798_v18 = vpop.f32.mrb[0].mxu0 }
  0xe6   : > { %v541_v20 = vmul.f32 %v798_v18, %v942_v17  ;;  %v814_v21 = vpop.f32.mrb[0].mxu1  ;;  %v405_v22 = vpop.f32.mrb[1].mxu0 }
  0xe7   : > { %v557_v23 = vmul.f32 %v814_v21, %v942_v17  ;;  %v539_v24 = vmul.f32 %v942_v17, %v405_v22  ;;  %v469_v25 = vpop.f32.mrb[1].mxu1  ;;  %v799_v26 = vpop.f32.mrb[2].mxu0 }
  0xe8   : > { %v580_v27 = vadd.f32 %v947_v19, %v541_v20  ;;  %v555_v28 = vmul.f32 %v942_v17, %v469_v25  ;;  %v542_v29 = vmul.f32 %v799_v26, %v942_v17  ;;  %v815_v30 = vpop.f32.mrb[2].mxu1  ;;  %v408_v31 = vpop.f32.mrb[3].mxu0 }
  0xe9   : > { %v596_v32 = vadd.f32 %v947_v19, %v557_v23  ;;  %v578_v33 = vadd.f32 %v947_v19, %v539_v24  ;;  %v558_v34 = vmul.f32 %v815_v30, %v942_v17  ;;  %v540_v35 = vmul.f32 %v942_v17, %v408_v31  ;;  %v472_v36 = vpop.f32.mrb[3].mxu1 }
  0xea   : > { %v612_v37 = vmax.f32 %v580_v27, 0.0  ;;  %v594_v38 = vadd.f32 %v947_v19, %v555_v28  ;;  %v581_v39 = vadd.f32 %v947_v19, %v542_v29  ;;  %v556_v40 = vmul.f32 %v942_v17, %v472_v36 }
  0xeb   : > { %v628_v41 = vmax.f32 %v596_v32, 0.0  ;;  %v610_v42 = vmax.f32 %v578_v33, 0.0  ;;  %v597_v43 = vadd.f32 %v947_v19, %v558_v34  ;;  %v579_v44 = vadd.f32 %v947_v19, %v540_v35 }
  0xec   : > { %645 = vst.msk [vmem:[%s959_s5 + $0x10] sm:$0xff] %vm642_vm1, %v612_v37  ;;  %v626_v45 = vmax.f32 %v594_v38, 0.0  ;;  %v613_v46 = vmax.f32 %v581_v39, 0.0  ;;  %v595_v47 = vadd.f32 %v947_v19, %v556_v40 }
  0xed   : > { %661 = vst.msk [vmem:[%s959_s5 + $0x90] sm:$0xff] %vm642_vm1, %v628_v41  ;;  %643 = vst.msk [vmem:[%s959_s5] sm:$0xff] %vm642_vm1, %v610_v42  ;;  %v629_v48 = vmax.f32 %v597_v43, 0.0  ;;  %v611_v49 = vmax.f32 %v579_v44, 0.0  ;;  %v802_v50 = vpop.f32.mrb[4].mxu0 }
  0xee   : > { %659 = vst.msk [vmem:[%s959_s5 + $0x80] sm:$0xff] %vm642_vm1, %v626_v45  ;;  %646 = vst.msk [vmem:[%s959_s5 + $0x18] sm:$0xff] %vm642_vm1, %v613_v46  ;;  %v627_v51 = vmax.f32 %v595_v47, 0.0  ;;  %v545_v52 = vmul.f32 %v802_v50, %v942_v17  ;;  %v818_v53 = vpop.f32.mrb[4].mxu1  ;;  %v421_v54 = vpop.f32.mrb[5].mxu0 }
  0xef   : > { %662 = vst.msk [vmem:[%s959_s5 + $0x98] sm:$0xff] %vm642_vm1, %v629_v48  ;;  %644 = vst.msk [vmem:[%s959_s5 + $0x8] sm:$0xff] %vm642_vm1, %v611_v49  ;;  %v561_v55 = vmul.f32 %v818_v53, %v942_v17  ;;  %v543_v56 = vmul.f32 %v942_v17, %v421_v54  ;;  %v485_v57 = vpop.f32.mrb[5].mxu1  ;;  %v803_v58 = vpop.f32.mrb[6].mxu0 }
  0xf0   : > { %660 = vst.msk [vmem:[%s959_s5 + $0x88] sm:$0xff] %vm642_vm1, %v627_v51  ;;  %v584_v59 = vadd.f32 %v947_v19, %v545_v52  ;;  %v559_v60 = vmul.f32 %v942_v17, %v485_v57  ;;  %v546_v61 = vmul.f32 %v803_v58, %v942_v17  ;;  %v819_v62 = vpop.f32.mrb[6].mxu1  ;;  %v424_v63 = vpop.f32.mrb[7].mxu0 }
  0xf1   : > { %v600_v0 = vadd.f32 %v947_v19, %v561_v55  ;;  %v582_v1 = vadd.f32 %v947_v19, %v543_v56  ;;  %v562_v2 = vmul.f32 %v819_v62, %v942_v17  ;;  %v544_v3 = vmul.f32 %v942_v17, %v424_v63  ;;  %v488_v4 = vpop.f32.mrb[7].mxu1 }
  0xf2   : > { %v616_v5 = vmax.f32 %v584_v59, 0.0  ;;  %v598_v6 = vadd.f32 %v947_v19, %v559_v60  ;;  %v585_v7 = vadd.f32 %v947_v19, %v546_v61  ;;  %v560_v8 = vmul.f32 %v942_v17, %v488_v4 }
  0xf3   : > { %v632_v9 = vmax.f32 %v600_v0, 0.0  ;;  %v614_v10 = vmax.f32 %v582_v1, 0.0  ;;  %v601_v11 = vadd.f32 %v947_v19, %v562_v2  ;;  %v583_v12 = vadd.f32 %v947_v19, %v544_v3 }
  0xf4   : > { %649 = vst.msk [vmem:[%s959_s5 + $0x30] sm:$0xff] %vm642_vm1, %v616_v5  ;;  %v630_v13 = vmax.f32 %v598_v6, 0.0  ;;  %v617_v14 = vmax.f32 %v585_v7, 0.0  ;;  %v599_v15 = vadd.f32 %v947_v19, %v560_v8 }
  0xf5   : > { %665 = vst.msk [vmem:[%s959_s5 + $0xb0] sm:$0xff] %vm642_vm1, %v632_v9  ;;  %647 = vst.msk [vmem:[%s959_s5 + $0x20] sm:$0xff] %vm642_vm1, %v614_v10  ;;  %v633_v16 = vmax.f32 %v601_v11, 0.0  ;;  %v615_v18 = vmax.f32 %v583_v12, 0.0  ;;  %v806_v20 = vpop.f32.mrb[8].mxu0 }
  0xf6   : > { %663 = vst.msk [vmem:[%s959_s5 + $0xa0] sm:$0xff] %vm642_vm1, %v630_v13  ;;  %650 = vst.msk [vmem:[%s959_s5 + $0x38] sm:$0xff] %vm642_vm1, %v617_v14  ;;  %v631_v21 = vmax.f32 %v599_v15, 0.0  ;;  %v549_v22 = vmul.f32 %v806_v20, %v942_v17  ;;  %v822_v23 = vpop.f32.mrb[8].mxu1  ;;  %v437_v24 = vpop.f32.mrb[9].mxu0 }
  0xf7   : > { %666 = vst.msk [vmem:[%s959_s5 + $0xb8] sm:$0xff] %vm642_vm1, %v633_v16  ;;  %648 = vst.msk [vmem:[%s959_s5 + $0x28] sm:$0xff] %vm642_vm1, %v615_v18  ;;  %v565_v25 = vmul.f32 %v822_v23, %v942_v17  ;;  %v547_v26 = vmul.f32 %v942_v17, %v437_v24  ;;  %v501_v27 = vpop.f32.mrb[9].mxu1  ;;  %v807_v28 = vpop.f32.mrb[10].mxu0 }
  0xf8   : > { %664 = vst.msk [vmem:[%s959_s5 + $0xa8] sm:$0xff] %vm642_vm1, %v631_v21  ;;  %v588_v29 = vadd.f32 %v947_v19, %v549_v22  ;;  %v563_v30 = vmul.f32 %v942_v17, %v501_v27  ;;  %v550_v31 = vmul.f32 %v807_v28, %v942_v17  ;;  %v823_v32 = vpop.f32.mrb[10].mxu1  ;;  %v440_v33 = vpop.f32.mrb[11].mxu0 }
  0xf9   : > { %v604_v34 = vadd.f32 %v947_v19, %v565_v25  ;;  %v586_v35 = vadd.f32 %v947_v19, %v547_v26  ;;  %v566_v36 = vmul.f32 %v823_v32, %v942_v17  ;;  %v548_v37 = vmul.f32 %v942_v17, %v440_v33  ;;  %v504_v38 = vpop.f32.mrb[11].mxu1 }
  0xfa   : > { %v620_v39 = vmax.f32 %v588_v29, 0.0  ;;  %v602_v40 = vadd.f32 %v947_v19, %v563_v30  ;;  %v589_v41 = vadd.f32 %v947_v19, %v550_v31  ;;  %v564_v42 = vmul.f32 %v942_v17, %v504_v38 }
  0xfb   : > { %v636_v43 = vmax.f32 %v604_v34, 0.0  ;;  %v618_v44 = vmax.f32 %v586_v35, 0.0  ;;  %v605_v45 = vadd.f32 %v947_v19, %v566_v36  ;;  %v587_v46 = vadd.f32 %v947_v19, %v548_v37 }
  0xfc   : > { %653 = vst.msk [vmem:[%s959_s5 + $0x50] sm:$0xff] %vm642_vm1, %v620_v39  ;;  %v634_v47 = vmax.f32 %v602_v40, 0.0  ;;  %v621_v48 = vmax.f32 %v589_v41, 0.0  ;;  %v603_v49 = vadd.f32 %v947_v19, %v564_v42 }
  0xfd   : > { %669 = vst.msk [vmem:[%s959_s5 + $0xd0] sm:$0xff] %vm642_vm1, %v636_v43  ;;  %651 = vst.msk [vmem:[%s959_s5 + $0x40] sm:$0xff] %vm642_vm1, %v618_v44  ;;  %v637_v50 = vmax.f32 %v605_v45, 0.0  ;;  %v619_v51 = vmax.f32 %v587_v46, 0.0  ;;  %v810_v52 = vpop.f32.mrb[12].mxu0 }
  0xfe   : > { %667 = vst.msk [vmem:[%s959_s5 + $0xc0] sm:$0xff] %vm642_vm1, %v634_v47  ;;  %654 = vst.msk [vmem:[%s959_s5 + $0x58] sm:$0xff] %vm642_vm1, %v621_v48  ;;  %v635_v53 = vmax.f32 %v603_v49, 0.0  ;;  %v553_v54 = vmul.f32 %v810_v52, %v942_v17  ;;  %v826_v55 = vpop.f32.mrb[12].mxu1  ;;  %v453_v56 = vpop.f32.mrb[13].mxu0 }
  0xff   : > { %670 = vst.msk [vmem:[%s959_s5 + $0xd8] sm:$0xff] %vm642_vm1, %v637_v50  ;;  %652 = vst.msk [vmem:[%s959_s5 + $0x48] sm:$0xff] %vm642_vm1, %v619_v51  ;;  %v569_v57 = vmul.f32 %v826_v55, %v942_v17  ;;  %v551_v58 = vmul.f32 %v942_v17, %v453_v56  ;;  %v517_v59 = vpop.f32.mrb[13].mxu1  ;;  %v811_v60 = vpop.f32.mrb[14].mxu0 }
 0x100   : > { %668 = vst.msk [vmem:[%s959_s5 + $0xc8] sm:$0xff] %vm642_vm1, %v635_v53  ;;  %v592_v61 = vadd.f32 %v947_v19, %v553_v54  ;;  %v567_v62 = vmul.f32 %v942_v17, %v517_v59  ;;  %v554_v63 = vmul.f32 %v811_v60, %v942_v17  ;;  %v827_v0 = vpop.f32.mrb[14].mxu1  ;;  %v456_v1 = vpop.f32.mrb[15].mxu0 }
 0x101   : > { %v608_v2 = vadd.f32 %v947_v19, %v569_v57  ;;  %v590_v3 = vadd.f32 %v947_v19, %v551_v58  ;;  %v570_v4 = vmul.f32 %v827_v0, %v942_v17  ;;  %v552_v5 = vmul.f32 %v942_v17, %v456_v1  ;;  %v520_v6 = vpop.f32.mrb[15].mxu1 }
 0x102   : > { %v624_v7 = vmax.f32 %v592_v61, 0.0  ;;  %v606_v8 = vadd.f32 %v947_v19, %v567_v62  ;;  %v593_v9 = vadd.f32 %v947_v19, %v554_v63  ;;  %v568_v10 = vmul.f32 %v942_v17, %v520_v6 }
 0x103   : > { %v640_v11 = vmax.f32 %v608_v2, 0.0  ;;  %v622_v12 = vmax.f32 %v590_v3, 0.0  ;;  %v609_v13 = vadd.f32 %v947_v19, %v570_v4  ;;  %v591_v14 = vadd.f32 %v947_v19, %v552_v5 }
 0x104   : > { %657 = vst.msk [vmem:[%s959_s5 + $0x70] sm:$0xff] %vm642_vm1, %v624_v7  ;;  %v638_v15 = vmax.f32 %v606_v8, 0.0  ;;  %v625_v16 = vmax.f32 %v593_v9, 0.0  ;;  %v607_v18 = vadd.f32 %v947_v19, %v568_v10 }
 0x105   : > { %673 = vst.msk [vmem:[%s959_s5 + $0xf0] sm:$0xff] %vm642_vm1, %v640_v11  ;;  %655 = vst.msk [vmem:[%s959_s5 + $0x60] sm:$0xff] %vm642_vm1, %v622_v12  ;;  %v641_v17 = vmax.f32 %v609_v13, 0.0  ;;  %v623_v20 = vmax.f32 %v591_v14, 0.0 }
 0x106   : > { %671 = vst.msk [vmem:[%s959_s5 + $0xe0] sm:$0xff] %vm642_vm1, %v638_v15  ;;  %658 = vst.msk [vmem:[%s959_s5 + $0x78] sm:$0xff] %vm642_vm1, %v625_v16  ;;  %v639_v21 = vmax.f32 %v607_v18, 0.0 }
 0x107   : > { %674 = vst.msk [vmem:[%s959_s5 + $0xf8] sm:$0xff] %vm642_vm1, %v641_v17  ;;  %656 = vst.msk [vmem:[%s959_s5 + $0x68] sm:$0xff] %vm642_vm1, %v623_v20 }
 0x108   : > { %672 = vst.msk [vmem:[%s959_s5 + $0xe8] sm:$0xff] %vm642_vm1, %v639_v21 }
 0x109 PF: > { %s14_s15 = sadd.s32 1, %s861_s15  }
 0x10a   : > { %p11_p4 = scmp.ge.s32.totalorder %s14_s15, 4  }
 0x10c   :  { %13 = sbr.rel (!%p11_p4) target bundleno = 1 (0x1), region = 66 }

// kernel: trans_conv_block.2
= control target key start
LH: loop header
LB: loop body
LE: loop exit
PB: predicated region body
PF: predicated region fallthrough
CT: control target
= control target key end

     0   :  { %s1646_s18 = smov 0   ;;  %s3155_s0 = inlined_call_operand.vmem [shape: s32[512,1], index: 0, kind: input, shape index: {}]   ;;  %s3156_s1 = inlined_call_operand.vmem [shape: s32[512,1], index: 1, kind: input, shape index: {}]   ;;  %s3157_s2 = inlined_call_operand.vmem [shape: s32[4,32], index: 2, kind: input, shape index: {}]   ;;  %s3158_s3 = inlined_call_operand.vmem [shape: bf16[512,16], index: 3, kind: input, shape index: {}]   ;;  %s3159_s4 = inlined_call_operand.vmem [shape: bf16[16,32], index: 4, kind: input, shape index: {}]   ;;  %s3160_s5 = inlined_call_operand.vmem [shape: f32[2,2,32], index: 5, kind: output, shape index: {}]  }
   0x1 LB: > { %s1652_s19 = sadd.s32 4294967295, %s1612_s18   ;;  %p1449_p0 = scmp.ge.s32.totalorder %s1612_s18, 1  ;;  %s1612_s18 = sphi %s1646_s18, %s15_s18  }
   0x2   : > { %p210_p1 = scmp.lt.s32.totalorder %s1612_s18, 3 }
   0x4   : > { %p211_p2 = pnand %p1449_p0, %p210_p1 }
   0x5   : > { %v1589_v0 = vld [vmem:[%s3159_s4] sm:$0xff] (!%p211_p2)   ;;  %v1614_v1 = vmov (!%p211_p2), 0   ;;  %s1450_s22 = sshll.u32 (!%p211_p2), %s1652_s19, 5  ;;  %vm390_vm0 = vcmask (!%p211_p2), 130048   ;;  %p265_p4 = scmp.lt.s32.totalorder (!%p211_p2), %s1652_s19, 1 }
   0x6   : > { %214 = sbr.rel (%p211_p2) target bundleno = 375 (0x177), region = 40  ;;  %1588 = vset.pattern.permute.xlu1 (!%p211_p2), %v1614_v1  ;;  %1587 = vset.pattern.permute.xlu0 (!%p211_p2), %v1614_v1  ;;  %p248_p3 = scmp.lt.s32.totalorder (!%p211_p2), %s1450_s22, 63 }
   0x7   : > { %1541 = vmatprep.subr.bf16.mxu0 (!%p211_p2), %v1589_v0  ;;  %1575 = vmatprep.subr.bf16.mxu1 (!%p211_p2), %v1589_v0 }
   0x8   : > { %1542 = vmatpush3.bf16.msra.mxu0 (!%p211_p2), %v1589_v0  ;;  %1576 = vmatpush3.bf16.msra.mxu1 (!%p211_p2), %v1589_v0 }
   0xd   : > { %s3443_s22 = smov (!%p248_p3, %s1450_s22), 63  ;;  %s3445_s19 = smov (!%p265_p4, %s1652_s19), 1 }
   0xe   : > { %s1451_s23 = sshll.u32 %s3443_s22, 3  ;;  %s1455_s24 = sshll.u32 %s3443_s22, 2 }
   0xf   : > { %s1669_s27 = scalar_lea.vmem %s3155_s0, %s1451_s23  ;;  %s1674_s30 = scalar_lea.vmem %s3158_s3, %s1455_s24 }
  0x10   : > { %v602_v2 = vld [vmem:[%s1669_s27 + $0x10] sm:$0xff]  ;;  %v600_v3 = vld [vmem:[%s1669_s27] sm:$0xff]  ;;  %v1592_v6 = vld [vmem:[%s1674_s30 + $0x8] sm:$0xff]   ;;  %s1739_s8 = scalar_lea.vmem %s3156_s1, %s1451_s23  ;;  %s1456_s11 = sshll.u32 %s3445_s19, 1 }
  0x11   : > { %672 = vperm.xlu1 %1588, %v602_v2   ;;  %666 = vperm.xlu0 %1587, %v600_v3   ;;  %v1590_v4 = vld [vmem:[%s1674_s30] sm:$0xff]   ;;  %v1593_v7 = vld [vmem:[%s1674_s30 + $0x48] sm:$0xff]   ;;  %v603_v8 = vld [vmem:[%s1669_s27 + $0x18] sm:$0xff]  ;;  %s268_s14 = scalar_lea.vmem %s3160_s5, %s1456_s11 }
  0x12   : > { %v1591_v5 = vld [vmem:[%s1674_s30 + $0x40] sm:$0xff]   ;;  %1543 = vmatprep.mubr.msk.bf16.mxu0 %vm390_vm0, %v1590_v4  ;;  %v601_v9 = vld [vmem:[%s1669_s27 + $0x8] sm:$0xff]  ;;  %v1594_v12 = vld [vmem:[%s1674_s30 + $0x10] sm:$0xff]  }
  0x13   : > { %1559 = vmatprep.mubr.msk.bf16.mxu1 %vm390_vm0, %v1591_v5  ;;  %1544 = vmatmul.mubr.msk.bf16.vlgmr.msra.gmra.mrb[0].mxu0 %vm390_vm0, %v1592_v6  ;;  %v605_v10 = vld [vmem:[%s1669_s27 + $0x28] sm:$0xff]  ;;  %v604_v11 = vld [vmem:[%s1669_s27 + $0x20] sm:$0xff]  ;;  %v1595_v13 = vld [vmem:[%s1674_s30 + $0x50] sm:$0xff]  }
  0x14   : > { %1560 = vmatmul.mubr.msk.bf16.vlgmr.msra.gmra.mrb[0].mxu1 %vm390_vm0, %v1593_v7  ;;  %1547 = vmatprep.mubr.msk.bf16.mxu0 %vm390_vm0, %v1594_v12  ;;  %v1596_v14 = vld [vmem:[%s1674_s30 + $0x18] sm:$0xff]   ;;  %v606_v17 = vld [vmem:[%s1669_s27 + $0x30] sm:$0xff]  ;;  %v1598_v18 = vld [vmem:[%s1674_s30 + $0x20] sm:$0xff]  }
  0x15   : > { %675 = vperm.xlu1 %1588, %v603_v8   ;;  %669 = vperm.xlu0 %1587, %v601_v9   ;;  %v1597_v15 = vld [vmem:[%s1674_s30 + $0x58] sm:$0xff]   ;;  %v1599_v19 = vld [vmem:[%s1674_s30 + $0x60] sm:$0xff]   ;;  %v609_v20 = vld [vmem:[%s1669_s27 + $0x48] sm:$0xff] }
  0x16   : > { %1563 = vmatprep.mubr.msk.bf16.mxu1 %vm390_vm0, %v1595_v13  ;;  %v607_v16 = vld [vmem:[%s1669_s27 + $0x38] sm:$0xff]  ;;  %v608_v21 = vld [vmem:[%s1669_s27 + $0x40] sm:$0xff]  ;;  %v1600_v22 = vld [vmem:[%s1674_s30 + $0x28] sm:$0xff]  }
  0x17   : > { %v1601_v23 = vld [vmem:[%s1674_s30 + $0x68] sm:$0xff]   ;;  %v611_v24 = vld [vmem:[%s1669_s27 + $0x58] sm:$0xff]  ;;  %v610_v25 = vld [vmem:[%s1669_s27 + $0x50] sm:$0xff] }
  0x18   : > { %v1602_v26 = vld [vmem:[%s1674_s30 + $0x30] sm:$0xff]   ;;  %v613_v28 = vld [vmem:[%s1669_s27 + $0x68] sm:$0xff]  ;;  %v612_v29 = vld [vmem:[%s1669_s27 + $0x60] sm:$0xff] }
  0x19   : > { %681 = vperm.xlu1 %1588, %v605_v10   ;;  %678 = vperm.xlu0 %1587, %v604_v11   ;;  %v1604_v27 = vld [vmem:[%s1674_s30 + $0x70] sm:$0xff]   ;;  %v1603_v30 = vld [vmem:[%s1674_s30 + $0x38] sm:$0xff]   ;;  %v617_v34 = vld [vmem:[%s1669_s27 + $0x88] sm:$0xff] }
  0x1a   : > { %v615_v31 = vld [vmem:[%s1669_s27 + $0x78] sm:$0xff]  ;;  %v614_v33 = vld [vmem:[%s1669_s27 + $0x70] sm:$0xff]  ;;  %v616_v35 = vld [vmem:[%s1669_s27 + $0x80] sm:$0xff] }
  0x1b   : > { %1548 = vmatmul.mubr.msk.bf16.gmra.mrb[4].mxu0 %vm390_vm0, %v1596_v14  ;;  %v1605_v32 = vld [vmem:[%s1674_s30 + $0x78] sm:$0xff]   ;;  %v618_v37 = vld [vmem:[%s1669_s27 + $0x90] sm:$0xff]  ;;  %v621_v38 = vld [vmem:[%s1669_s27 + $0xa8] sm:$0xff] }
  0x1c   : > { %1564 = vmatmul.mubr.msk.bf16.gmra.mrb[4].mxu1 %vm390_vm0, %v1597_v15  ;;  %1551 = vmatprep.mubr.msk.bf16.mxu0 %vm390_vm0, %v1598_v18  ;;  %v619_v36 = vld [vmem:[%s1669_s27 + $0x98] sm:$0xff]  ;;  %v620_v39 = vld [vmem:[%s1669_s27 + $0xa0] sm:$0xff]  ;;  %v622_v41 = vld [vmem:[%s1669_s27 + $0xb0] sm:$0xff] }
  0x1d   : > { %687 = vperm.xlu1 %1588, %v607_v16   ;;  %684 = vperm.xlu0 %1587, %v606_v17   ;;  %v623_v40 = vld [vmem:[%s1669_s27 + $0xb8] sm:$0xff]  ;;  %v625_v42 = vld [vmem:[%s1669_s27 + $0xc8] sm:$0xff]  ;;  %v624_v43 = vld [vmem:[%s1669_s27 + $0xc0] sm:$0xff] }
  0x1e   : > { %1567 = vmatprep.mubr.msk.bf16.mxu1 %vm390_vm0, %v1599_v19  ;;  %v632_v44 = vld [vmem:[%s1739_s8] sm:$0xff]  ;;  %v626_v45 = vld [vmem:[%s1669_s27 + $0xd0] sm:$0xff]  ;;  %v633_v47 = vld [vmem:[%s1739_s8 + $0x8] sm:$0xff] }
  0x1f   : > { %v634_v46 = vld [vmem:[%s1739_s8 + $0x10] sm:$0xff]  ;;  %v636_v48 = vld [vmem:[%s1739_s8 + $0x20] sm:$0xff]  ;;  %v635_v49 = vld [vmem:[%s1739_s8 + $0x18] sm:$0xff] }
  0x20   : > { %v638_v50 = vld [vmem:[%s1739_s8 + $0x30] sm:$0xff]  ;;  %v637_v51 = vld [vmem:[%s1739_s8 + $0x28] sm:$0xff]  ;;  %v640_v52 = vld [vmem:[%s1739_s8 + $0x40] sm:$0xff] }
  0x21   : > { %693 = vperm.xlu1 %1588, %v609_v20   ;;  %690 = vperm.xlu0 %1587, %v608_v21   ;;  %v639_v53 = vld [vmem:[%s1739_s8 + $0x38] sm:$0xff]  ;;  %v642_v54 = vld [vmem:[%s1739_s8 + $0x50] sm:$0xff]  ;;  %v641_v55 = vld [vmem:[%s1739_s8 + $0x48] sm:$0xff] }
  0x22   : > { %v644_v56 = vld [vmem:[%s1739_s8 + $0x60] sm:$0xff]  ;;  %v643_v57 = vld [vmem:[%s1739_s8 + $0x58] sm:$0xff]  ;;  %v646_v58 = vld [vmem:[%s1739_s8 + $0x70] sm:$0xff] }
  0x23   : > { %1552 = vmatmul.mubr.msk.bf16.gmra.mrb[8].mxu0 %vm390_vm0, %v1600_v22  ;;  %v645_v59 = vld [vmem:[%s1739_s8 + $0x68] sm:$0xff]  ;;  %v648_v60 = vld [vmem:[%s1739_s8 + $0x80] sm:$0xff]  ;;  %v647_v61 = vld [vmem:[%s1739_s8 + $0x78] sm:$0xff] }
  0x24   : > { %1568 = vmatmul.mubr.msk.bf16.gmra.mrb[8].mxu1 %vm390_vm0, %v1601_v23  ;;  %1555 = vmatprep.mubr.msk.bf16.mxu0 %vm390_vm0, %v1602_v26  ;;  %v650_v62 = vld [vmem:[%s1739_s8 + $0x90] sm:$0xff]  ;;  %v649_v63 = vld [vmem:[%s1739_s8 + $0x88] sm:$0xff]  ;;  %v652_v0 = vld [vmem:[%s1739_s8 + $0xa0] sm:$0xff] }
  0x25   : > { %699 = vperm.xlu1 %1588, %v611_v24   ;;  %696 = vperm.xlu0 %1587, %v610_v25   ;;  %v651_v1 = vld [vmem:[%s1739_s8 + $0x98] sm:$0xff]  ;;  %v654_v2 = vld [vmem:[%s1739_s8 + $0xb0] sm:$0xff]  ;;  %v653_v3 = vld [vmem:[%s1739_s8 + $0xa8] sm:$0xff] }
  0x26   : > { %1571 = vmatprep.mubr.msk.bf16.mxu1 %vm390_vm0, %v1604_v27  ;;  %v656_v4 = vld [vmem:[%s1739_s8 + $0xc0] sm:$0xff]  ;;  %v655_v5 = vld [vmem:[%s1739_s8 + $0xb8] sm:$0xff]  ;;  %v658_v6 = vld [vmem:[%s1739_s8 + $0xd0] sm:$0xff] }
  0x27   : > { %v657_v7 = vld [vmem:[%s1739_s8 + $0xc8] sm:$0xff]  ;;  %v659_v8 = vld [vmem:[%s1739_s8 + $0xd8] sm:$0xff]  ;;  %v660_v10 = vld [vmem:[%s1739_s8 + $0xe0] sm:$0xff] }
  0x28   : > { %v627_v9 = vld [vmem:[%s1669_s27 + $0xd8] sm:$0xff]  ;;  %v628_v11 = vld [vmem:[%s1669_s27 + $0xe0] sm:$0xff]  ;;  %v661_v12 = vld [vmem:[%s1739_s8 + $0xe8] sm:$0xff] }
  0x29   : > { %705 = vperm.xlu1 %1588, %v613_v28   ;;  %702 = vperm.xlu0 %1587, %v612_v29   ;;  %v629_v13 = vld [vmem:[%s1669_s27 + $0xe8] sm:$0xff]  ;;  %v662_v14 = vld [vmem:[%s1739_s8 + $0xf0] sm:$0xff]  ;;  %v663_v16 = vld [vmem:[%s1739_s8 + $0xf8] sm:$0xff] }
  0x2a   : > { %v630_v15 = vld [vmem:[%s1669_s27 + $0xf0] sm:$0xff]  ;;  %v631_v17 = vld [vmem:[%s1669_s27 + $0xf8] sm:$0xff] }
  0x2b   : > { %1556 = vmatmul.mubr.msk.bf16.gmra.mrb[12].mxu0 %vm390_vm0, %v1603_v30 }
  0x2c   : > { %1572 = vmatmul.mubr.msk.bf16.gmra.mrb[12].mxu1 %vm390_vm0, %v1605_v32 }
  0x2d   : > { %711 = vperm.xlu1 %1588, %v615_v31   ;;  %708 = vperm.xlu0 %1587, %v614_v33  }
  0x31   : > { %717 = vperm.xlu1 %1588, %v617_v34   ;;  %714 = vperm.xlu0 %1587, %v616_v35  }
  0x35   : > { %723 = vperm.xlu1 %1588, %v619_v36   ;;  %720 = vperm.xlu0 %1587, %v618_v37  }
  0x39   : > { %729 = vperm.xlu1 %1588, %v621_v38   ;;  %726 = vperm.xlu0 %1587, %v620_v39  }
  0x3d   : > { %735 = vperm.xlu1 %1588, %v623_v40   ;;  %732 = vperm.xlu0 %1587, %v622_v41  }
  0x41   : > { %741 = vperm.xlu1 %1588, %v625_v42   ;;  %738 = vperm.xlu0 %1587, %v624_v43  }
  0x45   : > { %866 = vperm.xlu1 %1588, %v632_v44   ;;  %744 = vperm.xlu0 %1587, %v626_v45  }
  0x49   : > { %872 = vperm.xlu1 %1588, %v634_v46   ;;  %869 = vperm.xlu0 %1587, %v633_v47  }
  0x4d   : > { %878 = vperm.xlu1 %1588, %v636_v48   ;;  %875 = vperm.xlu0 %1587, %v635_v49   ;;  %v761_v48 = vlaneseq }
  0x51   : > { %884 = vperm.xlu1 %1588, %v638_v50   ;;  %881 = vperm.xlu0 %1587, %v637_v51   ;;  %v762_v51 = vshrl.u32 %v761_v48, 7 }
  0x55   : > { %890 = vperm.xlu1 %1588, %v640_v52   ;;  %887 = vperm.xlu0 %1587, %v639_v53  }
  0x59   : > { %896 = vperm.xlu1 %1588, %v642_v54   ;;  %893 = vperm.xlu0 %1587, %v641_v55   ;;  %v763_v54 = vsub.s32 0, %v762_v51  ;;  %v799_v55 = vsub.s32 1, %v762_v51 }
  0x5d   : > { %902 = vperm.xlu1 %1588, %v644_v56   ;;  %899 = vperm.xlu0 %1587, %v643_v57   ;;  %v664_v56 = vld [vmem:[%s3157_s2] sm:$0xf] }
  0x61   : > { %908 = vperm.xlu1 %1588, %v646_v58   ;;  %905 = vperm.xlu0 %1587, %v645_v59   ;;  %v1842_v59 = vrot.slane %v664_v56, %v763_v54 }
  0x65   : > { %914 = vperm.xlu1 %1588, %v648_v60   ;;  %911 = vperm.xlu0 %1587, %v647_v61   ;;  %v1844_v60 = vrot.slane %v664_v56, %v799_v55  ;;  %v963_v61 = vsub.s32 2, %v762_v51 }
  0x69   : > { %920 = vperm.xlu1 %1588, %v650_v62   ;;  %917 = vperm.xlu0 %1587, %v649_v63   ;;  %v1031_v63 = vsub.s32 3, %v762_v51 }
  0x6d   : > { %926 = vperm.xlu1 %1588, %v652_v0   ;;  %923 = vperm.xlu0 %1587, %v651_v1   ;;  %v1852_v1 = vrot.slane %v664_v56, %v963_v61 }
  0x71   : > { %932 = vperm.xlu1 %1588, %v654_v2   ;;  %929 = vperm.xlu0 %1587, %v653_v3  }
  0x75   : > { %938 = vperm.xlu1 %1588, %v656_v4   ;;  %935 = vperm.xlu0 %1587, %v655_v5   ;;  %v1866_v4 = vrot.slane %v664_v56, %v1031_v63 }
  0x79   : > { %944 = vperm.xlu1 %1588, %v658_v6   ;;  %941 = vperm.xlu0 %1587, %v657_v7  }
  0x7d   : > { %947 = vperm.xlu1 %1588, %v659_v8   ;;  %747 = vperm.xlu0 %1587, %v627_v9  }
  0x81   : > { %950 = vperm.xlu1 %1588, %v660_v10   ;;  %750 = vperm.xlu0 %1587, %v628_v11   ;;  %v3169_v10 = vmov 0 }
  0x85   : > { %953 = vperm.xlu1 %1588, %v661_v12   ;;  %753 = vperm.xlu0 %1587, %v629_v13  }
  0x89   : > { %956 = vperm.xlu1 %1588, %v662_v14   ;;  %756 = vperm.xlu0 %1587, %v630_v15  }
  0x8d   : > { %959 = vperm.xlu1 %1588, %v663_v16   ;;  %759 = vperm.xlu0 %1587, %v631_v17  }
  0x90   : > { %v673_v18 = vpop.permute.xlu1 %672  ;;  %v667_v19 = vpop.permute.xlu0 %666 }
  0x91   : > { %vm767_vm1 = vcmp.ge.s32.totalorder %v673_v18, %v1842_v59  ;;  %vm803_vm2 = vcmp.lt.s32.totalorder %v673_v18, %v1844_v60  ;;  %vm765_vm3 = vcmp.ge.s32.totalorder %v667_v19, %v1842_v59  ;;  %vm801_vm4 = vcmp.lt.s32.totalorder %v667_v19, %v1844_v60 }
  0x92   : > { %vm1860_vm7 = vmand %vm767_vm1, %vm803_vm2  ;;  %v3161_v19 = vmov 0.0  }
  0x93   : > { %vm833_vm10 = vmand %vm765_vm3, %vm801_vm4 }
  0x94   : > { %v676_v20 = vpop.permute.xlu1 %675  ;;  %v670_v21 = vpop.permute.xlu0 %669 }
  0x95   : > { %vm768_vm5 = vcmp.ge.s32.totalorder %v676_v20, %v1842_v59  ;;  %vm804_vm6 = vcmp.lt.s32.totalorder %v676_v20, %v1844_v60  ;;  %vm766_vm8 = vcmp.ge.s32.totalorder %v670_v21, %v1842_v59  ;;  %vm802_vm9 = vcmp.lt.s32.totalorder %v670_v21, %v1844_v60 }
  0x96   : > { %vm1871_vm12 = vmand %vm768_vm5, %vm804_vm6 }
  0x97   : > { %vm1876_vm14 = vmand %vm766_vm8, %vm802_vm9 }
  0x98   : > { %v1779_v22 = vpop.permute.xlu1 %681  ;;  %v1781_v23 = vpop.permute.xlu0 %678 }
  0x99   : > { %vm769_vm15 = vcmp.ge.s32.totalorder %v1781_v23, %v1842_v59  ;;  %vm805_vm0 = vcmp.lt.s32.totalorder %v1781_v23, %v1844_v60 }
  0x9a   : > { %vm1892_vm5 = vmand %vm769_vm15, %vm805_vm0 }
  0x9b   : > { %v3170_v10 = vsel %vm1892_vm5, 4294967295, %v3169_v10 }
  0x9c   : > { %v1783_v24 = vpop.permute.xlu1 %687  ;;  %v1785_v25 = vpop.permute.xlu0 %684 }
  0x9d   : > { %vm808_vm5 = vcmp.lt.s32.totalorder %v1783_v24, %v1844_v60 }
  0xa0   : > { %v1787_v26 = vpop.permute.xlu1 %693  ;;  %v1789_v27 = vpop.permute.xlu0 %690 }
  0xa4   : > { %v1791_v28 = vpop.permute.xlu1 %699  ;;  %v1793_v29 = vpop.permute.xlu0 %696 }
  0xa8   : > { %v1795_v30 = vpop.permute.xlu1 %705  ;;  %v1797_v31 = vpop.permute.xlu0 %702 }
  0xac   : > { %v1799_v32 = vpop.permute.xlu1 %711  ;;  %v1801_v33 = vpop.permute.xlu0 %708 }
  0xb0   : > { %v1803_v34 = vpop.permute.xlu1 %717  ;;  %v1805_v35 = vpop.permute.xlu0 %714 }
  0xb4   : > { %v1807_v36 = vpop.permute.xlu1 %723  ;;  %v1809_v37 = vpop.permute.xlu0 %720 }
  0xb8   : > { %v1811_v38 = vpop.permute.xlu1 %729  ;;  %v1813_v39 = vpop.permute.xlu0 %726 }
  0xbc   : > { %v1815_v40 = vpop.permute.xlu1 %735  ;;  %v1817_v41 = vpop.permute.xlu0 %732 }
  0xc0   : > { %v1819_v42 = vpop.permute.xlu1 %741  ;;  %v1821_v43 = vpop.permute.xlu0 %738 }
  0xc4   : > { %v867_v44 = vpop.permute.xlu1 %866  ;;  %v1823_v45 = vpop.permute.xlu0 %744 }
  0xc5   : > { %vm965_vm11 = vcmp.ge.s32.totalorder %v867_v44, %v1852_v1  ;;  %vm1033_vm2 = vcmp.lt.s32.totalorder %v867_v44, %v1866_v4 }
  0xc6   : > { %vm997_vm1 = vmand %vm833_vm10, %vm965_vm11  ;;  %vm770_vm10 = vcmp.ge.s32.totalorder %v1779_v22, %v1842_v59  ;;  %vm771_vm11 = vcmp.ge.s32.totalorder %v1785_v25, %v1842_v59 }
  0xc7   : > { %vm1898_vm8 = vmand %vm997_vm1, %vm1033_vm2  ;;  %vm773_vm2 = vcmp.ge.s32.totalorder %v1789_v27, %v1842_v59 }
  0xc8   : > { %v873_v46 = vpop.permute.xlu1 %872  ;;  %v1825_v47 = vpop.permute.xlu0 %869  ;;  %v1490_v44 = vsel %vm1898_vm8, 1.0, %v3161_v19 }
  0xc9   : > { %vm967_vm13 = vcmp.ge.s32.totalorder %v873_v46, %v1852_v1  ;;  %vm1035_vm4 = vcmp.lt.s32.totalorder %v873_v46, %v1866_v4  ;;  %vm966_vm6 = vcmp.ge.s32.totalorder %v1825_v47, %v1852_v1  ;;  %vm1034_vm1 = vcmp.lt.s32.totalorder %v1825_v47, %v1866_v4 }
  0xca   : > { %vm999_vm3 = vmand %vm1860_vm7, %vm967_vm13  ;;  %vm806_vm7 = vcmp.lt.s32.totalorder %v1779_v22, %v1844_v60  ;;  %vm807_vm13 = vcmp.lt.s32.totalorder %v1785_v25, %v1844_v60 }
  0xcb   : > { %vm1067_vm15 = vmand %vm999_vm3, %vm1035_vm4 }
  0xcc   : > { %v1827_v49 = vpop.permute.xlu1 %878  ;;  %v1829_v50 = vpop.permute.xlu0 %875  ;;  %vm1916_vm0 = vmand %vm1876_vm14, %vm966_vm6  ;;  %v1492_v20 = vsel %vm1067_vm15, 1.0, %v3161_v19 }
  0xcd   : > { %vm968_vm9 = vcmp.ge.s32.totalorder %v1829_v50, %v1852_v1  ;;  %vm1036_vm14 = vcmp.lt.s32.totalorder %v1829_v50, %v1866_v4  ;;  %vm1936_vm4 = vmand %vm770_vm10, %vm806_vm7  ;;  %vm1037_vm10 = vcmp.lt.s32.totalorder %v1827_v49, %v1866_v4 }
  0xce   : > { %vm1928_vm3 = vmand %vm1871_vm12, %vm968_vm9  ;;  %vm809_vm12 = vcmp.lt.s32.totalorder %v1789_v27, %v1844_v60 }
  0xcf   : > { %vm1940_vm6 = vmand %vm771_vm11, %vm807_vm13  ;;  %vm969_vm11 = vcmp.ge.s32.totalorder %v1827_v49, %v1852_v1  ;;  %vm3183_vm13 = vcmp.ge.s32.totalorder %v1783_v24, %v1842_v59 }
  0xd0   : > { %v1831_v52 = vpop.permute.xlu1 %884  ;;  %v1833_v53 = vpop.permute.xlu0 %881  ;;  %vm1956_vm7 = vmand %vm1916_vm0, %vm1034_vm1  ;;  %vm811_vm1 = vcmp.lt.s32.totalorder %v1793_v29, %v1844_v60 }
  0xd1   : > { %vm1975_vm15 = vmand %vm3183_vm13, %vm808_vm5  ;;  %vm971_vm5 = vcmp.ge.s32.totalorder %v1831_v52, %v1852_v1  ;;  %v1491_v11 = vsel %vm1956_vm7, 1.0, %v3161_v19  ;;  %vm3197_vm7 = vcmp.lt.s32.totalorder %v1787_v26, %v1844_v60 }
  0xd2   : > { %vm1988_vm8 = vmand %vm1928_vm3, %vm1036_vm14  ;;  %vm775_vm14 = vcmp.ge.s32.totalorder %v1793_v29, %v1842_v59  ;;  %vm3190_vm3 = vnez %v3170_v10 }
  0xd3   : > { %vm2004_vm13 = vmand %vm773_vm2, %vm809_vm12  ;;  %v1493_v10 = vsel %vm1988_vm8, 1.0, %v3161_v19  ;;  %vm3198_vm2 = vcmp.ge.s32.totalorder %v1787_v26, %v1842_v59 }
  0xd4   : > { %v1838_v57 = vpop.permute.xlu1 %890  ;;  %v1840_v58 = vpop.permute.xlu0 %887  ;;  %vm2028_vm9 = vmand %vm3190_vm3, %vm969_vm11  ;;  %vm1039_vm3 = vcmp.lt.s32.totalorder %v1831_v52, %v1866_v4  ;;  %v3213_v52 = vmov 0 }
  0xd5   : > { %vm2047_vm11 = vmand %vm1940_vm6, %vm971_vm5  ;;  %vm3209_vm5 = vcmask 261120  }
  0xd6   : > { %vm2067_vm6 = vmand %vm775_vm14, %vm811_vm1  ;;  %vm3203_vm1 = vcmp.lt.s32.totalorder %v1797_v31, %v1844_v60  ;;  %vm3204_vm14 = vcmp.ge.s32.totalorder %v1797_v31, %v1842_v59 }
  0xd7   : > { %vm2081_vm12 = vmand %vm3198_vm2, %vm3197_vm7  ;;  %vm973_vm7 = vcmp.ge.s32.totalorder %v1838_v57, %v1852_v1 }
  0xd8   : > { %v1846_v62 = vpop.permute.xlu1 %896  ;;  %v1848_v0 = vpop.permute.xlu0 %893  ;;  %vm2100_vm2 = vmand %vm2028_vm9, %vm1037_vm10 }
  0xd9   : > { %vm2112_vm8 = vmand %vm3204_vm14, %vm3203_vm1  ;;  %vm3211_vm1 = vcmp.lt.s32.totalorder %v1805_v35, %v1844_v60 }
  0xda   : > { %vm2121_vm9 = vmand %vm2047_vm11, %vm1039_vm3  ;;  %vm3212_vm11 = vcmp.ge.s32.totalorder %v1805_v35, %v1842_v59 }
  0xdb   : > { %vm3210_vm0 = vmmov %vm3209_vm5 }
  0xdc   : > { %v1858_v2 = vpop.permute.xlu1 %902  ;;  %v1868_v5 = vpop.permute.xlu0 %899  ;;  %vm2139_vm3 = vmand %vm3212_vm11, %vm3211_vm1  ;;  %vm3218_vm11 = vcmp.lt.s32.totalorder %v1791_v28, %v1844_v60  ;;  %vm3224_vm1 = vcmask 261120  }
  0xdd   : > { %v3214_v52 = vsel %vm2139_vm3, 4294967295, %v3213_v52  ;;  %vm3225_vm10 = vmmov %vm3224_vm1 }
  0xde   : > { %vm3226_vm3 = vmmov %vm3224_vm1 }
  0xe0   : > { %v1885_v8 = vpop.permute.xlu1 %908  ;;  %v1887_v9 = vpop.permute.xlu0 %905 }
  0xe4   : > { %v1912_v12 = vpop.permute.xlu0 %911  ;;  %v1934_v15 = vpop.permute.xlu1 %914 }
  0xe6   : > { %v1545_v18 = vpop.f32.mrb[0].mxu0 }
  0xe7   : > { %v1962_v22 = vmul.f32 %v1545_v18, %v1492_v20  ;;  %v1964_v23 = vpop.f32.mrb[0].mxu1  ;;  %v473_v25 = vpop.f32.mrb[1].mxu0 }
  0xe8   : > { %v1161_v24 = vmul.f32 %v1490_v44, %v473_v25  ;;  %v1994_v48 = vpop.f32.mrb[1].mxu1  ;;  %v1996_v51 = vpop.permute.xlu0 %917 }
  0xe9   : > { %v2015_v54 = vmul.f32 %v1545_v18, %v1962_v22  ;;  %v1546_v55 = vpop.f32.mrb[2].mxu0  ;;  %v2017_v56 = vpop.f32.mrb[2].mxu1  ;;  %v1197_v6 = vsel %vm3224_vm1, %v1962_v22, 0.0  ;;  %vm3234_vm1 = vcmp.lt.s32.totalorder %v1833_v53, %v1866_v4 }
  0xea   : > { %v1263_v61 = vmul.f32 %v1161_v24, %v473_v25  ;;  %v476_v63 = vpop.f32.mrb[3].mxu0  ;;  %v2034_v3 = vpop.f32.mrb[3].mxu1  ;;  %v1164_v14 = vmul.f32 %v1546_v55, %v1493_v10  ;;  %v1194_v20 = vsel %vm3209_vm5, %v1161_v24, 0.0  ;;  %vm3219_vm5 = vcmp.ge.s32.totalorder %v1791_v28, %v1842_v59 }
  0xeb   : > { %v2053_v7 = vpop.permute.xlu1 %920  ;;  %v1162_v17 = vmul.f32 %v1491_v11, %v476_v63 }
  0xec   : > { %v2129_v25 = vpop.permute.xlu0 %923  ;;  %v1295_v10 = vsel %vm3225_vm10, %v1263_v61, 0.0  ;;  %v1266_v11 = vmul.f32 %v1546_v55, %v1164_v14 }
  0xed   : > { %v1195_v31 = vsel %vm3210_vm0, %v1162_v17, 0.0  ;;  %v1264_v21 = vmul.f32 %v1162_v17, %v476_v63  ;;  %vm3215_vm0 = vcmp.ge.s32.totalorder %v1833_v53, %v1852_v1  ;;  %v3240_v53 = vmov 0 }
  0xee   : > { %v2131_v44 = vpop.f32.mrb[4].mxu0  ;;  %vm2150_vm14 = vmand %vm1936_vm4, %vm3215_vm0  ;;  %v1196_v35 = vadd.f32 %v1195_v31, %v1194_v20 }
  0xef   : > { %v2158_v24 = vpop.f32.mrb[4].mxu1  ;;  %v489_v27 = vpop.f32.mrb[5].mxu0  ;;  %vm2166_vm4 = vmand %vm3219_vm5, %vm3218_vm11  ;;  %v1296_v28 = vsel %vm3226_vm3, %v1264_v21, 0.0  ;;  %vm3227_vm5 = vcmp.lt.s32.totalorder %v1801_v33, %v1844_v60  ;;  %vm3228_vm11 = vcmp.ge.s32.totalorder %v1801_v33, %v1842_v59  ;;  %vm1040_vm3 = vcmp.lt.s32.totalorder %v1840_v58, %v1866_v4 }
  0xf0   : > { %vm2175_vm0 = vmand %vm2004_vm13, %vm973_vm7  ;;  %v2183_v17 = vpop.f32.mrb[5].mxu1  ;;  %vm3231_vm7 = vcmp.ge.s32.totalorder %v1840_v58, %v1852_v1  ;;  %v1198_v55 = vadd.f32 %v1197_v6, %v1196_v35  ;;  %v1297_v61 = vadd.f32 %v1296_v28, %v1295_v10  ;;  %v2206_v20 = vpop.permute.xlu1 %926  ;;  %v1494_v33 = vsel %vm2100_vm2, 1.0, %v3161_v19 }
  0xf1   : > { %vm2191_vm13 = vmand %vm3228_vm11, %vm3227_vm5  ;;  %v2211_v31 = vpop.f32.mrb[6].mxu0  ;;  %vm3237_vm11 = vcmask 261120   ;;  %v1165_v35 = vmul.f32 %v1494_v33, %v489_v27  ;;  %v2227_v10 = vpop.f32.mrb[6].mxu1  ;;  %vm3243_vm2 = vcmp.ge.s32.totalorder %v1809_v37, %v1842_v59 }
  0xf2   : > { %vm2200_vm10 = vmand %vm1975_vm15, %vm3231_vm7  ;;  %v1298_v21 = vsel %vm3237_vm11, %v2015_v54, 0.0  ;;  %v492_v6 = vpop.f32.mrb[7].mxu0  ;;  %v2242_v47 = vpop.f32.mrb[7].mxu1  ;;  %v1300_v28 = vsel %vm3237_vm11, %v1266_v11, 0.0 }
  0xf3   : > { %vm2218_vm15 = vmand %vm2150_vm14, %vm3234_vm1  ;;  %vm3239_vm14 = vcmp.lt.s32.totalorder %v1838_v57, %v1866_v4  ;;  %v1299_v54 = vadd.f32 %v1298_v21, %v1297_v61  ;;  %v2280_v61 = vpop.permute.xlu0 %929 }
  0xf4   : > { %vm3238_vm7 = vmmov %vm3237_vm11 }
  0xf5   : > { %v1199_v26 = vsel %vm3238_vm7, %v1164_v14, 0.0  ;;  %vm2236_vm1 = vmand %vm2175_vm0, %vm3239_vm14  ;;  %vm3242_vm7 = vcmp.lt.s32.totalorder %v1809_v37, %v1844_v60  ;;  %v1301_v11 = vadd.f32 %v1300_v28, %v1299_v54  ;;  %vm3267_vm14 = vcmp.ge.s32.totalorder %v1934_v15, %v1852_v1 }
  0xf6   : > { %v3241_v53 = vsel %vm2236_vm1, 4294967295, %v3240_v53  ;;  %v1200_v14 = vadd.f32 %v1199_v26, %v1198_v55  ;;  %vm2250_vm5 = vmand %vm3243_vm2, %vm3242_vm7  ;;  %v1267_v55 = vmul.f32 %v1165_v35, %v489_v27  ;;  %vm3249_vm7 = vcmp.ge.s32.totalorder %v1846_v62, %v1852_v1  ;;  %v2309_v21 = vpop.f32.mrb[8].mxu0 }
  0xf7   : > { %vm2259_vm0 = vmand %vm2200_vm10, %vm1040_vm3  ;;  %v3254_v27 = vmov 0  ;;  %v2327_v54 = vpop.f32.mrb[9].mxu0 }
  0xf8   : > { %vm3248_vm1 = vmmov %vm3237_vm11  ;;  %vm3253_vm11 = vcmp.ge.s32.totalorder %v1795_v30, %v1842_v59  ;;  %v1497_v28 = vsel %vm2259_vm0, 1.0, %v3161_v19  ;;  %v2393_v58 = vpop.f32.mrb[10].mxu0 }
  0xf9   : > { %v1201_v37 = vsel %vm3248_vm1, %v1165_v35, 0.0  ;;  %vm2274_vm10 = vmand %vm2067_vm6, %vm3249_vm7  ;;  %vm3252_vm1 = vcmp.lt.s32.totalorder %v1795_v30, %v1844_v60  ;;  %vm3256_vm7 = vcmp.ge.s32.totalorder %v1848_v0, %v1852_v1  ;;  %v1496_v30 = vsel %vm2121_vm9, 1.0, %v3161_v19  ;;  %v2325_v35 = vpop.f32.mrb[8].mxu1 }
  0xfa   : > { %v1202_v22 = vadd.f32 %v1201_v37, %v1200_v14  ;;  %vm2288_vm2 = vmand %vm3253_vm11, %vm3252_vm1  ;;  %vm3259_vm1 = vcmask 261120   ;;  %v1167_v49 = vmul.f32 %v2131_v44, %v1496_v30  ;;  %vm3263_vm9 = vcmp.lt.s32.totalorder %v1799_v32, %v1844_v60  ;;  %v2415_v30 = vpop.f32.mrb[11].mxu0 }
  0xfb   : > { %v3255_v27 = vsel %vm2288_vm2, 4294967295, %v3254_v27  ;;  %vm2299_vm3 = vmand %vm2081_vm12, %vm3256_vm7  ;;  %v1302_v33 = vsel %vm3259_vm1, %v1267_v55, 0.0  ;;  %vm3260_vm12 = vcmp.ge.s32.totalorder %v1858_v2, %v1852_v1  ;;  %vm3264_vm1 = vcmp.ge.s32.totalorder %v1799_v32, %v1842_v59  ;;  %v2352_v32 = vpop.permute.xlu1 %932  ;;  %v2360_v55 = vpop.f32.mrb[9].mxu1 }
  0xfc   : > { %vm2318_vm7 = vmand %vm2112_vm8, %vm3260_vm12  ;;  %v1303_v26 = vadd.f32 %v1302_v33, %v1301_v11  ;;  %vm1045_vm12 = vcmp.lt.s32.totalorder %v1858_v2, %v1866_v4  ;;  %vm3268_vm11 = vnez %v3214_v52  ;;  %v1495_v37 = vsel %vm2218_vm15, 1.0, %v3161_v19 }
  0xfd   : > { %vm2335_vm8 = vmand %vm3264_vm1, %vm3263_vm9  ;;  %vm3275_vm1 = vcmp.lt.s32.totalorder %v1846_v62, %v1866_v4  ;;  %vm3278_vm15 = vcmp.ge.s32.totalorder %v1868_v5, %v1852_v1  ;;  %v1168_v62 = vmul.f32 %v2211_v31, %v1497_v28  ;;  %v1166_v63 = vmul.f32 %v1495_v37, %v492_v6  ;;  %v2445_v28 = vpop.permute.xlu0 %935 }
  0xfe   : > { %vm2346_vm6 = vmand %vm3268_vm11, %vm3267_vm14  ;;  %vm3271_vm14 = vcmp.lt.s32.totalorder %v1803_v34, %v1844_v60  ;;  %vm3272_vm11 = vcmp.ge.s32.totalorder %v1803_v34, %v1842_v59  ;;  %v1269_v2 = vmul.f32 %v2131_v44, %v1167_v49 }
  0xff   : > { %vm2368_vm9 = vmand %vm3272_vm11, %vm3271_vm14  ;;  %vm1044_vm14 = vcmp.lt.s32.totalorder %v1868_v5, %v1866_v4  ;;  %v1268_v29 = vmul.f32 %v1166_v63, %v492_v6 }
 0x100   : > { %vm2377_vm0 = vmand %vm2274_vm10, %vm3275_vm1  ;;  %vm3281_vm10 = vcmp.lt.s32.totalorder %v1848_v0, %v1866_v4  ;;  %v2417_v0 = vpop.f32.mrb[10].mxu1 }
 0x101   : > { %vm2386_vm2 = vmand %vm2166_vm4, %vm3278_vm15  ;;  %vm3284_vm4 = vcmp.ge.s32.totalorder %v1885_v8, %v1852_v1  ;;  %vm3289_vm15 = vcmp.lt.s32.totalorder %v1934_v15, %v1866_v4  ;;  %v2447_v37 = vpop.f32.mrb[11].mxu1 }
 0x102   : > { %vm2400_vm11 = vmand %vm2299_vm3, %vm3281_vm10  ;;  %vm3292_vm10 = vcmask 261120  }
 0x103   : > { %vm2409_vm1 = vmand %vm2191_vm13, %vm3284_vm4  ;;  %vm1047_vm4 = vcmp.lt.s32.totalorder %v1885_v8, %v1866_v4  ;;  %v1203_v33 = vsel %vm3292_vm10, %v1166_v63, 0.0  ;;  %vm3295_vm10 = vnez %v3241_v53  ;;  %v1270_v53 = vmul.f32 %v2211_v31, %v1168_v62  ;;  %v2497_v63 = vpop.permute.xlu1 %938 }
 0x104   : > { %vm2428_vm13 = vmand %vm2318_vm7, %vm1045_vm12  ;;  %v1204_v44 = vadd.f32 %v1203_v33, %v1202_v22  ;;  %v1498_v6 = vsel %vm3295_vm10, 1.0, %v3161_v19  ;;  %vm3296_vm12 = vcmp.ge.s32.totalorder %v2053_v7, %v1852_v1  ;;  %v2499_v33 = vpop.f32.mrb[12].mxu0  ;;  %v1500_v8 = vsel %vm2377_vm0, 1.0, %v3161_v19 }
 0x105   : > { %vm2439_vm3 = vmand %vm2346_vm6, %vm3289_vm15  ;;  %vm3299_vm15 = vcmask 261120   ;;  %v1169_v13 = vmul.f32 %v1498_v6, %v2327_v54  ;;  %v1171_v46 = vmul.f32 %v2309_v21, %v1500_v8  ;;  %vm3325_vm0 = vcmp.lt.s32.totalorder %v1807_v36, %v1844_v60 }
 0x106   : > { %vm2458_vm6 = vmand %vm2386_vm2, %vm1044_vm14  ;;  %vm1051_vm14 = vcmp.lt.s32.totalorder %v2053_v7, %v1866_v4  ;;  %v1205_v22 = vsel %vm3299_vm15, %v1167_v49, 0.0  ;;  %v1506_v49 = vsel %vm2439_vm3, 1.0, %v3161_v19 }
 0x107   : > { %vm2474_vm2 = vmand %vm2250_vm5, %vm3296_vm12  ;;  %v1206_v34 = vadd.f32 %v1205_v22, %v1204_v44  ;;  %vm3303_vm12 = vcmp.ge.s32.totalorder %v1887_v9, %v1852_v1  ;;  %v2517_v44 = vpop.f32.mrb[12].mxu1  ;;  %v1177_v5 = vmul.f32 %v1506_v49, %v1994_v48  ;;  %v1501_v11 = vsel %vm2458_vm6, 1.0, %v3161_v19 }
 0x108   : > { %vm3300_vm10 = vmmov %vm3299_vm15  ;;  %vm982_vm15 = vcmp.ge.s32.totalorder %v1996_v51, %v1852_v1  ;;  %v1172_v50 = vmul.f32 %v2393_v58, %v1501_v11 }
 0x109   : > { %v1304_v14 = vsel %vm3300_vm10, %v1268_v29, 0.0  ;;  %vm2488_vm7 = vmand %vm2409_vm1, %vm1047_vm4  ;;  %vm3304_vm1 = vnez %v3255_v27  ;;  %v1306_v16 = vsel %vm3300_vm10, %v1269_v2, 0.0  ;;  %v2515_v29 = vpop.f32.mrb[13].mxu0 }
 0x10a   : > { %v1305_v31 = vadd.f32 %v1304_v14, %v1303_v26  ;;  %vm2506_vm4 = vmand %vm3304_vm1, %vm3303_vm12  ;;  %v2532_v6 = vpop.f32.mrb[14].mxu0 }
 0x10b   : > { %vm3307_vm3 = vmmov %vm3300_vm10 }
 0x10c   : > { %v1207_v26 = vsel %vm3307_vm3, %v1168_v62, 0.0  ;;  %vm2528_vm1 = vmand %vm2474_vm2, %vm1051_vm14  ;;  %v1307_v62 = vadd.f32 %v1306_v16, %v1305_v31  ;;  %vm3310_vm3 = vcmp.ge.s32.totalorder %v1912_v12, %v1852_v1  ;;  %vm1048_vm2 = vcmp.lt.s32.totalorder %v1912_v12, %v1866_v4  ;;  %v2552_v31 = vpop.f32.mrb[15].mxu0 }
 0x10d   : > { %v1208_v2 = vadd.f32 %v1207_v26, %v1206_v34  ;;  %vm2541_vm5 = vmand %vm2335_vm8, %vm3310_vm3  ;;  %v2550_v34 = vpop.permute.xlu0 %941  ;;  %vm1050_vm3 = vcmp.lt.s32.totalorder %v1996_v51, %v1866_v4  ;;  %v2566_v26 = vpop.f32.mrb[13].mxu1  ;;  %v1508_v52 = vsel %vm2528_vm1, 1.0, %v3161_v19 }
 0x10e   : > { %vm3313_vm14 = vmmov %vm3300_vm10  ;;  %v1179_v51 = vmul.f32 %v1964_v23, %v1508_v52 }
 0x10f   : > { %v1308_v22 = vsel %vm3313_vm14, %v1270_v53, 0.0  ;;  %vm3314_vm12 = vmmov %vm3300_vm10  ;;  %v1271_v53 = vmul.f32 %v1169_v13, %v2327_v54  ;;  %vm825_vm14 = vcmp.lt.s32.totalorder %v1821_v43, %v1844_v60  ;;  %v1273_v54 = vmul.f32 %v2309_v21, %v1171_v46 }
 0x110   : > { %v1209_v14 = vsel %vm3314_vm12, %v1169_v13, 0.0  ;;  %vm2559_vm8 = vmand %vm2368_vm9, %vm982_vm15  ;;  %v1309_v16 = vadd.f32 %v1308_v22, %v1307_v62  ;;  %vm823_vm9 = vcmp.lt.s32.totalorder %v1817_v41, %v1844_v60  ;;  %vm3317_vm15 = vcmp.lt.s32.totalorder %v1887_v9, %v1866_v4  ;;  %v2586_v13 = vpop.f32.mrb[14].mxu1  ;;  %v2605_v62 = vpop.permute.xlu1 %944 }
 0x111   : > { %v1210_v49 = vadd.f32 %v1209_v14, %v1208_v2  ;;  %vm2582_vm10 = vmand %vm2506_vm4, %vm3317_vm15  ;;  %vm789_vm12 = vcmp.ge.s32.totalorder %v1821_v43, %v1842_v59  ;;  %vm3322_vm4 = vcmask 261120   ;;  %v2607_v2 = vpop.f32.mrb[15].mxu1  ;;  %v1279_v22 = vmul.f32 %v1177_v5, %v1994_v48  ;;  %v2662_v15 = vpop.permute.xlu0 %747 }
 0x112   : > { %vm2597_vm1 = vmand %vm2541_vm5, %vm1048_vm2  ;;  %v1310_v27 = vsel %vm3322_vm4, %v1271_v53, 0.0  ;;  %v1499_v14 = vsel %vm2400_vm11, 1.0, %v3161_v19  ;;  %vm3326_vm2 = vcmp.ge.s32.totalorder %v1807_v36, %v1842_v59  ;;  %v1502_v36 = vsel %vm2428_vm13, 1.0, %v3161_v19 }
 0x113   : > { %vm2615_vm5 = vmand %vm2559_vm8, %vm1050_vm3  ;;  %v1311_v7 = vadd.f32 %v1310_v27, %v1309_v16  ;;  %vm827_vm3 = vcmp.lt.s32.totalorder %v1823_v45, %v1844_v60  ;;  %v1170_v18 = vmul.f32 %v1499_v14, %v2415_v30  ;;  %vm3329_vm11 = vcmp.lt.s32.totalorder %v1811_v38, %v1844_v60 }
 0x114   : > { %vm2629_vm15 = vmand %vm3326_vm2, %vm3325_vm0  ;;  %vm3330_vm4 = vcmp.ge.s32.totalorder %v1811_v38, %v1842_v59  ;;  %vm985_vm8 = vcmp.ge.s32.totalorder %v2206_v20, %v1852_v1  ;;  %v1504_v38 = vsel %vm2488_vm7, 1.0, %v3161_v19  ;;  %v1503_v16 = vsel %vm2582_vm10, 1.0, %v3161_v19 }
 0x115   : > { %vm2651_vm0 = vmand %vm3330_vm4, %vm3329_vm11  ;;  %vm3333_vm13 = vcmp.lt.s32.totalorder %v1813_v39, %v1844_v60  ;;  %vm3334_vm11 = vcmp.ge.s32.totalorder %v1813_v39, %v1842_v59  ;;  %vm3335_vm2 = vcmask 261120   ;;  %v1507_v8 = vsel %vm2615_vm5, 1.0, %v3161_v19 }
 0x116   : > { %vm853_vm4 = vmand %vm3334_vm11, %vm3333_vm13  ;;  %v2677_v52 = vsel %vm3335_vm2, %v1177_v5, 0.0  ;;  %vm984_vm7 = vcmp.ge.s32.totalorder %v2129_v25, %v1852_v1  ;;  %v1505_v57 = vsel %vm2597_vm1, 1.0, %v3161_v19  ;;  %vm3336_vm10 = vcmp.ge.s32.totalorder %v1817_v41, %v1842_v59  ;;  %v2764_v19 = vpop.permute.xlu0 %750 }
 0x117   : > { %vm2693_vm13 = vmand %vm3336_vm10, %vm823_vm9  ;;  %v2698_v5 = vsel %vm3335_vm2, %v1279_v22, 0.0  ;;  %v1272_v9 = vmul.f32 %v1170_v18, %v2415_v30  ;;  %v1281_v12 = vmul.f32 %v1964_v23, %v1179_v51  ;;  %vm1053_vm9 = vcmp.lt.s32.totalorder %v2206_v20, %v1866_v4  ;;  %v2715_v22 = vpop.permute.xlu1 %947 }
 0x118   : > { %vm3339_vm5 = vmmov %vm3335_vm2  ;;  %vm1052_vm11 = vcmp.lt.s32.totalorder %v2129_v25, %v1866_v4  ;;  %v1213_v30 = vsel %vm3335_vm2, %v1171_v46, 0.0  ;;  %v1274_v14 = vmul.f32 %v2393_v58, %v1172_v50  ;;  %v1178_v20 = vmul.f32 %v1507_v8, %v2034_v3 }
 0x119   : > { %v1211_v27 = vsel %vm3339_vm5, %v1170_v18, 0.0  ;;  %vm2707_vm1 = vmand %vm853_vm4, %vm985_vm8  ;;  %v1173_v18 = vmul.f32 %v1502_v36, %v2515_v29  ;;  %vm3345_vm4 = vcmp.lt.s32.totalorder %v1815_v40, %v1844_v60  ;;  %vm3346_vm5 = vcmp.ge.s32.totalorder %v1815_v40, %v1842_v59 }
 0x11a   : > { %v1212_v21 = vadd.f32 %v1211_v27, %v1210_v49  ;;  %vm2719_vm10 = vmand %vm2629_vm15, %vm984_vm7  ;;  %vm987_vm7 = vcmp.ge.s32.totalorder %v2352_v32, %v1852_v1  ;;  %v3369_v53 = vmov 0.0  }
 0x11b   : > { %vm3344_vm8 = vmmov %vm3335_vm2  ;;  %vm986_vm2 = vcmp.ge.s32.totalorder %v2280_v61, %v1852_v1 }
 0x11c   : > { %v1312_v11 = vsel %vm3344_vm8, %v1272_v9, 0.0  ;;  %vm2733_vm6 = vmand %vm3346_vm5, %vm3345_vm4  ;;  %v1214_v40 = vadd.f32 %v1213_v30, %v1212_v21  ;;  %v1275_v9 = vmul.f32 %v1173_v18, %v2515_v29 }
 0x11d   : > { %vm2743_vm15 = vmand %vm789_vm12, %vm825_vm14  ;;  %v1313_v46 = vadd.f32 %v1312_v11, %v1311_v7  ;;  %vm3353_vm12 = vcmask 261120   ;;  %v1176_v11 = vmul.f32 %v2532_v6, %v1505_v57 }
 0x11e   : > { %vm2756_vm8 = vmand %vm2707_vm1, %vm1053_vm9  ;;  %v1314_v43 = vsel %vm3353_vm12, %v1273_v54, 0.0 }
 0x11f   : > { %vm3354_vm14 = vmmov %vm3353_vm12 }
 0x120   : > { %v1215_v36 = vsel %vm3354_vm14, %v1172_v50, 0.0  ;;  %vm3355_vm4 = vmmov %vm3353_vm12  ;;  %v1315_v50 = vadd.f32 %v1314_v43, %v1313_v46  ;;  %vm1055_vm12 = vcmp.lt.s32.totalorder %v2352_v32, %v1866_v4 }
 0x121   : > { %v1217_v27 = vsel %vm3355_vm4, %v1173_v18, 0.0  ;;  %vm3356_vm5 = vmmov %vm3355_vm4  ;;  %v1216_v41 = vadd.f32 %v1215_v36, %v1214_v40  ;;  %v1174_v18 = vmul.f32 %v1503_v16, %v2552_v31  ;;  %v2865_v36 = vpop.permute.xlu0 %753 }
 0x122   : > { %v2767_v7 = vsel %vm3356_vm5, %v1179_v51, 0.0  ;;  %vm2775_vm1 = vmand %vm2719_vm10, %vm1052_vm11  ;;  %v1175_v51 = vmul.f32 %v2499_v33, %v1504_v38  ;;  %v2807_v38 = vpop.permute.xlu1 %950 }
 0x123   : > { %vm2784_vm9 = vmand %vm2693_vm13, %vm987_vm7  ;;  %vm1054_vm7 = vcmp.lt.s32.totalorder %v2280_v61, %v1866_v4  ;;  %v1218_v23 = vadd.f32 %v1217_v27, %v1216_v41  ;;  %v1509_v46 = vsel %vm2775_vm1, 1.0, %v3369_v53  ;;  %vm991_vm1 = vcmp.ge.s32.totalorder %v2605_v62, %v1852_v1 }
 0x124   : > { %vm3361_vm14 = vmmov %vm3355_vm4  ;;  %v1277_v32 = vmul.f32 %v2499_v33, %v1175_v51  ;;  %v1276_v43 = vmul.f32 %v1174_v18, %v2552_v31  ;;  %v1280_v27 = vmul.f32 %v1178_v20, %v2034_v3 }
 0x125   : > { %v1316_v25 = vsel %vm3361_vm14, %v1274_v14, 0.0  ;;  %vm3362_vm11 = vmmov %vm3355_vm4  ;;  %v1510_v14 = vsel %vm2756_vm8, 1.0, %v3369_v53 }
 0x126   : > { %v1318_v8 = vsel %vm3362_vm11, %v1275_v9, 0.0  ;;  %vm3363_vm10 = vmmov %vm3355_vm4  ;;  %v1317_v30 = vadd.f32 %v1316_v25, %v1315_v50  ;;  %vm3366_vm4 = vcmp.ge.s32.totalorder %v1823_v45, %v1842_v59  ;;  %v1181_v61 = vmul.f32 %v1510_v14, %v2183_v17  ;;  %v2899_v50 = vpop.permute.xlu1 %953 }
 0x127   : > { %v2794_v21 = vsel %vm3363_vm10, %v1281_v12, 0.0  ;;  %vm2801_vm13 = vmand %vm2651_vm0, %vm986_vm2  ;;  %vm989_vm0 = vcmp.ge.s32.totalorder %v2497_v63, %v1852_v1  ;;  %vm3370_vm2 = vcmp.lt.s32.totalorder %v1819_v42, %v1844_v60  ;;  %v1278_v9 = vmul.f32 %v2532_v6, %v1176_v11  ;;  %v757_v12 = vpop.permute.xlu0 %756 }
 0x128   : > { %vm2815_vm5 = vmand %vm3366_vm4, %vm827_vm3  ;;  %vm3371_vm3 = vcmp.ge.s32.totalorder %v1819_v42, %v1842_v59  ;;  %v1319_v42 = vadd.f32 %v1318_v8, %v1317_v30 }
 0x129   : > { %vm2832_vm14 = vmand %vm3371_vm3, %vm3370_vm2  ;;  %vm1056_vm2 = vcmp.lt.s32.totalorder %v2445_v28, %v1866_v4 }
 0x12a   : > { %vm3374_vm11 = vmmov %vm3363_vm10  ;;  %vm988_vm10 = vcmp.ge.s32.totalorder %v2445_v28, %v1852_v1 }
 0x12b   : > { %v1227_v40 = vsel %vm3374_vm11, %v1178_v20, 0.0  ;;  %vm2845_vm8 = vmand %vm2784_vm9, %vm1055_vm12  ;;  %v1180_v20 = vmul.f32 %v2017_v56, %v1509_v46 }
 0x12c   : > { %vm2856_vm4 = vmand %vm2801_vm13, %vm1054_vm7  ;;  %vm1057_vm13 = vcmp.lt.s32.totalorder %v2497_v63, %v1866_v4 }
 0x12d   : > { %vm3379_vm9 = vmmov %vm3374_vm11  ;;  %v1511_v25 = vsel %vm2856_vm4, 1.0, %v3369_v53  ;;  %v1282_v46 = vmul.f32 %v2017_v56, %v1180_v20 }
 0x12e   : > { %v1219_v48 = vsel %vm3379_vm9, %v1174_v18, 0.0  ;;  %vm1021_vm12 = vmand %vm2743_vm15, %vm989_vm0  ;;  %vm1059_vm15 = vcmp.lt.s32.totalorder %v2605_v62, %v1866_v4  ;;  %v1182_v16 = vmul.f32 %v1511_v25, %v2242_v47 }
 0x12f   : > { %v1220_v33 = vadd.f32 %v1219_v48, %v1218_v23  ;;  %vm2878_vm7 = vmand %vm2733_vm6, %vm988_vm10  ;;  %vm792_vm10 = vcmp.ge.s32.totalorder %v2662_v15, %v1842_v59  ;;  %v1283_v23 = vmul.f32 %v1181_v61, %v2183_v17  ;;  %v1512_v17 = vsel %vm2845_vm8, 1.0, %v3369_v53 }
 0x130   : > { %vm3382_vm3 = vmmov %vm3379_vm9 }
 0x131   : > { %v1221_v3 = vsel %vm3382_vm3, %v1175_v51, 0.0  ;;  %vm3383_vm11 = vmmov %vm3382_vm3 }
 0x132   : > { %v1320_v58 = vsel %vm3383_vm11, %v1276_v43, 0.0  ;;  %vm2893_vm6 = vmand %vm2815_vm5, %vm991_vm1  ;;  %v1222_v49 = vadd.f32 %v1221_v3, %v1220_v33  ;;  %vm828_vm5 = vcmp.lt.s32.totalorder %v2662_v15, %v1844_v60  ;;  %vm992_vm11 = vcmp.ge.s32.totalorder %v2715_v22, %v1852_v1 }
 0x133   : > { %v1321_v54 = vadd.f32 %v1320_v58, %v1319_v42  ;;  %vm2901_vm0 = vmand %vm1021_vm12, %vm1057_vm13  ;;  %vm990_vm13 = vcmp.ge.s32.totalorder %v2550_v34, %v1852_v1  ;;  %v2980_v42 = vpop.permute.xlu1 %956 }
 0x134   : > { %vm3388_vm1 = vmmov %vm3382_vm3 }
 0x135   : > { %v1322_v41 = vsel %vm3388_vm1, %v1277_v32, 0.0  ;;  %vm3389_vm9 = vmmov %vm3388_vm1  ;;  %v1183_v32 = vmul.f32 %v2158_v24, %v1512_v17 }
 0x136   : > { %v1223_v29 = vsel %vm3389_vm9, %v1176_v11, 0.0  ;;  %vm2919_vm12 = vmand %vm2878_vm7, %vm1056_vm2  ;;  %v1323_v39 = vadd.f32 %v1322_v41, %v1321_v54  ;;  %vm793_vm7 = vcmp.ge.s32.totalorder %v2764_v19, %v1842_v59  ;;  %vm829_vm2 = vcmp.lt.s32.totalorder %v2764_v19, %v1844_v60 }
 0x137   : > { %v1224_v8 = vadd.f32 %v1223_v29, %v1222_v49  ;;  %vm2931_vm4 = vmand %vm2893_vm6, %vm1059_vm15  ;;  %v1513_v48 = vsel %vm2919_vm12, 1.0, %v3369_v53  ;;  %v1285_v63 = vmul.f32 %v2158_v24, %v1183_v32 }
 0x138   : > { %vm3394_vm3 = vmmov %vm3388_vm1  ;;  %v1516_v24 = vsel %vm2931_vm4, 1.0, %v3369_v53 }
 0x139   : > { %v1324_v30 = vsel %vm3394_vm3, %v1278_v9, 0.0  ;;  %vm2951_vm6 = vmand %vm792_vm10, %vm828_vm5  ;;  %v1226_v14 = vadd.f32 %v2677_v52, %v1224_v8  ;;  %vm1058_vm10 = vcmp.lt.s32.totalorder %v2550_v34, %v1866_v4  ;;  %v1187_v62 = vmul.f32 %v2325_v35, %v1516_v24 }
 0x13a   : > { %v1325_v11 = vadd.f32 %v1324_v30, %v1323_v39  ;;  %vm3397_vm15 = vmmov %vm3388_vm1 }
 0x13b   : > { %v1328_v18 = vsel %vm3397_vm15, %v1280_v27, 0.0  ;;  %vm1022_vm8 = vmand %vm2832_vm14, %vm990_vm13  ;;  %v1228_v52 = vadd.f32 %v1227_v40, %v1226_v14  ;;  %vm830_vm15 = vcmp.lt.s32.totalorder %v2865_v36, %v1844_v60  ;;  %v1284_v27 = vmul.f32 %v1182_v16, %v2242_v47 }
 0x13c   : > { %vm3398_vm5 = vmmov %vm3388_vm1  ;;  %vm993_vm1 = vcmp.ge.s32.totalorder %v2807_v38, %v1852_v1  ;;  %v1327_v45 = vadd.f32 %v2698_v5, %v1325_v11 }
 0x13d   : > { %v1233_v15 = vsel %vm3398_vm5, %v1181_v61, 0.0  ;;  %vm2975_vm9 = vmand %vm793_vm7, %vm829_vm2  ;;  %v1230_v5 = vadd.f32 %v2767_v7, %v1228_v52  ;;  %v1514_v61 = vsel %vm2901_vm0, 1.0, %v3369_v53  ;;  %v760_v7 = vpop.permute.xlu0 %759  ;;  %vm831_vm0 = vcmp.lt.s32.totalorder %v757_v12, %v1844_v60 }
 0x13e   : > { %vm3401_vm14 = vmmov %vm3394_vm3  ;;  %v1329_v40 = vadd.f32 %v1328_v18, %v1327_v45  ;;  %v1289_v45 = vmul.f32 %v2325_v35, %v1187_v62 }
 0x13f   : > { %v1231_v34 = vsel %vm3401_vm14, %v1180_v20, 0.0  ;;  %vm3402_vm13 = vmmov %vm3394_vm3  ;;  %vm794_vm3 = vcmp.ge.s32.totalorder %v2865_v36, %v1842_v59  ;;  %v1185_v36 = vmul.f32 %v1514_v61, %v2360_v55 }
 0x140   : > { %v1334_v57 = vsel %vm3402_vm13, %v1283_v23, 0.0  ;;  %vm1024_vm7 = vmand %vm2951_vm6, %vm992_vm11  ;;  %vm1060_vm11 = vcmp.lt.s32.totalorder %v2715_v22, %v1866_v4  ;;  %v1232_v31 = vadd.f32 %v1231_v34, %v1230_v5  ;;  %v1331_v47 = vadd.f32 %v2794_v21, %v1329_v40 }
 0x141   : > { %vm2993_vm2 = vmand %vm1022_vm8, %vm1058_vm10  ;;  %vm795_vm10 = vcmp.ge.s32.totalorder %v757_v12, %v1842_v59  ;;  %v1184_v22 = vmul.f32 %v2227_v10, %v1513_v48  ;;  %vm796_vm13 = vcmp.ge.s32.totalorder %v760_v7, %v1842_v59  ;;  %v1287_v17 = vmul.f32 %v1185_v36, %v2360_v55 }
 0x142   : > { %vm3405_vm12 = vmmov %vm3398_vm5  ;;  %v1515_v3 = vsel %vm2993_vm2, 1.0, %v3369_v53  ;;  %vm1061_vm5 = vcmp.lt.s32.totalorder %v2807_v38, %v1866_v4  ;;  %v1234_v9 = vadd.f32 %v1233_v15, %v1232_v31  ;;  %v960_v38 = vpop.permute.xlu1 %959 }
 0x143   : > { %v1332_v43 = vsel %vm3405_vm12, %v1282_v46, 0.0  ;;  %vm1025_vm6 = vmand %vm2975_vm9, %vm993_vm1  ;;  %vm994_vm1 = vcmp.ge.s32.totalorder %v2899_v50, %v1852_v1  ;;  %v1286_v8 = vmul.f32 %v2227_v10, %v1184_v22  ;;  %v1186_v39 = vmul.f32 %v1515_v3, %v2447_v37 }
 0x144   : > { %vm3014_vm8 = vmand %vm1024_vm7, %vm1060_vm11  ;;  %v1333_v58 = vadd.f32 %v1332_v43, %v1331_v47  ;;  %vm832_vm7 = vcmp.lt.s32.totalorder %v760_v7, %v1844_v60 }
 0x145   : > { %vm3035_vm9 = vmand %vm794_vm3, %vm830_vm15  ;;  %vm995_vm3 = vcmp.ge.s32.totalorder %v2980_v42, %v1852_v1  ;;  %v1517_v28 = vsel %vm3014_vm8, 1.0, %v3369_v53  ;;  %v1288_v46 = vmul.f32 %v1186_v39, %v2447_v37 }
 0x146   : > { %vm3039_vm14 = vmand %vm1025_vm6, %vm1061_vm5  ;;  %v1335_v41 = vadd.f32 %v1334_v57, %v1333_v58 }
 0x147   : > { %vm3412_vm2 = vmmov %vm3405_vm12 }
 0x148   : > { %v1235_v49 = vsel %vm3412_vm2, %v1182_v16, 0.0  ;;  %vm3054_vm15 = vmand %vm795_vm10, %vm831_vm0  ;;  %vm996_vm10 = vcmp.ge.s32.totalorder %v960_v38, %v1852_v1  ;;  %vm1062_vm0 = vcmp.lt.s32.totalorder %v2899_v50, %v1866_v4  ;;  %v1518_v50 = vsel %vm3039_vm14, 1.0, %v3369_v53 }
 0x149   : > { %vm3415_vm12 = vmmov %vm3412_vm2  ;;  %v1236_v29 = vadd.f32 %v1235_v49, %v1234_v9  ;;  %v1188_v16 = vmul.f32 %v2417_v0, %v1517_v28  ;;  %v1189_v34 = vmul.f32 %v1518_v50, %v2566_v26 }
 0x14a   : > { %v1237_v6 = vsel %vm3415_vm12, %v1183_v32, 0.0  ;;  %vm3067_vm11 = vmand %vm3035_vm9, %vm994_vm1 }
 0x14b   : > { %vm3418_vm6 = vmmov %vm3412_vm2  ;;  %v1238_v10 = vadd.f32 %v1237_v6, %v1236_v29  ;;  %v1290_v5 = vmul.f32 %v2417_v0, %v1188_v16  ;;  %v1291_v7 = vmul.f32 %v1189_v34, %v2566_v26 }
 0x14c   : > { %v1336_v51 = vsel %vm3418_vm6, %v1284_v27, 0.0  ;;  %vm3079_vm4 = vmand %vm796_vm13, %vm832_vm7  ;;  %vm1063_vm13 = vcmp.lt.s32.totalorder %v2980_v42, %v1866_v4 }
 0x14d   : > { %v1337_v30 = vadd.f32 %v1336_v51, %v1335_v41  ;;  %vm3093_vm5 = vmand %vm3054_vm15, %vm995_vm3  ;;  %vm1064_vm15 = vcmp.lt.s32.totalorder %v960_v38, %v1866_v4 }
 0x14e   : > { %vm3423_vm1 = vmmov %vm3412_vm2 }
 0x14f   : > { %v1338_v60 = vsel %vm3423_vm1, %v1285_v63, 0.0  ;;  %vm3424_vm9 = vmmov %vm3423_vm1 }
 0x150   : > { %v1239_v12 = vsel %vm3424_vm9, %v1184_v22, 0.0  ;;  %vm1094_vm8 = vmand %vm3067_vm11, %vm1062_vm0  ;;  %v1339_v11 = vadd.f32 %v1338_v60, %v1337_v30 }
 0x151   : > { %v1240_v14 = vadd.f32 %v1239_v12, %v1238_v10  ;;  %vm1028_vm7 = vmand %vm3079_vm4, %vm996_vm10  ;;  %v1519_v52 = vsel %vm1094_vm8, 1.0, %v3369_v53 }
 0x152   : > { %vm3425_vm2 = vmmov %vm3423_vm1  ;;  %v1190_v4 = vmul.f32 %v1519_v52, %v2607_v2 }
 0x153   : > { %v1340_v55 = vsel %vm3425_vm2, %v1286_v8, 0.0  ;;  %vm3426_vm3 = vmmov %vm3423_vm1 }
 0x154   : > { %v1241_v18 = vsel %vm3426_vm3, %v1185_v36, 0.0  ;;  %vm1095_vm14 = vmand %vm3093_vm5, %vm1063_vm13  ;;  %v1341_v56 = vadd.f32 %v1340_v55, %v1339_v11  ;;  %v1292_v3 = vmul.f32 %v1190_v4, %v2607_v2 }
 0x155   : > { %v1242_v15 = vadd.f32 %v1241_v18, %v1240_v14  ;;  %vm3427_vm12 = vmmov %vm3423_vm1  ;;  %v1520_v32 = vsel %vm1095_vm14, 1.0, %v3369_v53 }
 0x156   : > { %v1342_v1 = vsel %vm3427_vm12, %v1287_v17, 0.0  ;;  %vm3428_vm11 = vmmov %vm3423_vm1  ;;  %v1191_v33 = vmul.f32 %v2517_v44, %v1520_v32  ;;  %vm1364_vm12 = vcmask 1040384  }
 0x157   : > { %v1243_v42 = vsel %vm3428_vm11, %v1186_v39, 0.0  ;;  %vm1096_vm6 = vmand %vm1028_vm7, %vm1064_vm15  ;;  %v1343_v57 = vadd.f32 %v1342_v1, %v1341_v56  ;;  %vm1366_vm11 = vcmask 254976  }
 0x158   : > { %v1244_v37 = vadd.f32 %v1243_v42, %v1242_v15  ;;  %vm3429_vm10 = vmmov %vm3423_vm1  ;;  %v1521_v35 = vsel %vm1096_vm6, 1.0, %v3369_v53  ;;  %v1293_v26 = vmul.f32 %v2517_v44, %v1191_v33 }
 0x159   : > { %v1245_v48 = vsel %vm3429_vm10, %v1187_v62, 0.0  ;;  %vm3430_vm4 = vmmov %vm3423_vm1  ;;  %v1192_v21 = vmul.f32 %v2586_v13, %v1521_v35 }
 0x15a   : > { %v1344_v19 = vsel %vm3430_vm4, %v1288_v46, 0.0  ;;  %v1246_v40 = vadd.f32 %v1245_v48, %v1244_v37  ;;  %vm3431_vm0 = vmmov %vm3423_vm1 }
 0x15b   : > { %v1345_v43 = vadd.f32 %v1344_v19, %v1343_v57  ;;  %v1346_v27 = vsel %vm3431_vm0, %v1289_v45, 0.0  ;;  %vm3432_vm5 = vmmov %vm3431_vm0  ;;  %v1294_v2 = vmul.f32 %v2586_v13, %v1192_v21 }
 0x15c   : > { %v1247_v61 = vsel %vm3432_vm5, %v1188_v16, 0.0  ;;  %vm3433_vm1 = vmmov %vm3431_vm0 }
 0x15d   : > { %v1248_v31 = vadd.f32 %v1247_v61, %v1246_v40  ;;  %v1347_v47 = vadd.f32 %v1346_v27, %v1345_v43  ;;  %v1249_v22 = vsel %vm3433_vm1, %v1189_v34, 0.0  ;;  %vm3434_vm9 = vmmov %vm3431_vm0 }
 0x15e   : > { %v1348_v0 = vsel %vm3434_vm9, %v1290_v5, 0.0  ;;  %vm3435_vm8 = vmmov %vm3431_vm0 }
 0x15f   : > { %v1250_v9 = vadd.f32 %v1249_v22, %v1248_v31  ;;  %v1349_v53 = vadd.f32 %v1348_v0, %v1347_v47  ;;  %v1350_v58 = vsel %vm3435_vm8, %v1291_v7, 0.0  ;;  %vm3436_vm13 = vmmov %vm3431_vm0 }
 0x160   : > { %v1251_v20 = vsel %vm3436_vm13, %v1190_v4, 0.0  ;;  %vm3437_vm7 = vmmov %vm3431_vm0 }
 0x161   : > { %v1351_v38 = vadd.f32 %v1350_v58, %v1349_v53  ;;  %v1252_v63 = vadd.f32 %v1251_v20, %v1250_v9  ;;  %v1253_v49 = vsel %vm3437_vm7, %v1191_v33, 0.0  ;;  %vm3438_vm2 = vmmov %vm3431_vm0 }
 0x162   : > { %v1352_v36 = vsel %vm3438_vm2, %v1292_v3, 0.0  ;;  %vm3439_vm3 = vmmov %vm3431_vm0 }
 0x163   : > { %v1254_v54 = vadd.f32 %v1253_v49, %v1252_v63  ;;  %v1353_v6 = vadd.f32 %v1352_v36, %v1351_v38  ;;  %v1354_v24 = vsel %vm3439_vm3, %v1293_v26, 0.0  ;;  %vm3440_vm14 = vmmov %vm3431_vm0 }
 0x164   : > { %v1255_v41 = vsel %vm3440_vm14, %v1192_v21, 0.0  ;;  %vm3441_vm15 = vmmov %vm3431_vm0 }
 0x165   : > { %v1355_v29 = vadd.f32 %v1354_v24, %v1353_v6  ;;  %v1256_v25 = vadd.f32 %v1255_v41, %v1254_v54  ;;  %v1356_v51 = vsel %vm3441_vm15, %v1294_v2, 0.0 }
 0x167   : > { %v1257_v44 = vrot.slane %v1256_v25, 4  ;;  %v1357_v8 = vadd.f32 %v1356_v51, %v1355_v29 }
 0x169   : > { %v1258_v39 = vadd.f32 %v1257_v44, %v1256_v25  ;;  %v1358_v23 = vrot.slane %v1357_v8, 4 }
 0x16b   : > { %v1259_v28 = vrot.slane %v1258_v39, 2  ;;  %v1359_v10 = vadd.f32 %v1358_v23, %v1357_v8 }
 0x16d   : > { %v1260_v30 = vadd.f32 %v1259_v28, %v1258_v39  ;;  %v1360_v13 = vrot.slane %v1359_v10, 2 }
 0x16f   : > { %v1261_v59 = vrot.slane %v1260_v30, 1  ;;  %v1361_v60 = vadd.f32 %v1360_v13, %v1359_v10 }
 0x171   : > { %v1362_v12 = vrot.slane %v1361_v60, 1  ;;  %v1262_v17 = vadd.f32 %v1261_v59, %v1260_v30 }
 0x173   : > { %v1363_v62 = vadd.f32 %v1362_v12, %v1361_v60 }
 0x175   : > { %v1365_v50 = vsel %vm1364_vm12, %v1262_v17, %v1363_v62 }
 0x176   : > { %1367 = vst.msk [vmem:[%s268_s14] sm:$0x3] %vm1366_vm11, %v1365_v50 }
 0x177 PF: > { %s15_s18 = sadd.s32 1, %s1612_s18  }
 0x178   : > { %p12_p5 = scmp.ge.s32.totalorder %s15_s18, 4  }
 0x17a   :  { %14 = sbr.rel (!%p12_p5) target bundleno = 1 (0x1), region = 76 }

</bundles_post_ra>
